<compile_context>
chip_gen: v5e
topology: v5e:2x2
jax: 0.10.0
libtpu: 0.0.40
codegen_flags: <defaults>
</compile_context>

<pallas_src>
import jax
import jax.numpy as jnp
from jax.experimental import pallas as pl
from jax.experimental.pallas import tpu as pltpu


def mlp_kernel(x_ref, w1_ref, b1_ref, w2_ref, b2_ref, w3_ref, b3_ref, o_ref):
    # Fused input prep: cast the f32 activation tile to bf16 in VMEM (VPU pack).
    x_bf = x_ref[...].astype(jnp.bfloat16)
    # Layer 1: (TB,784)bf16 @ (784,512)bf16 -> f32 acc, +b1(f32), ReLU
    h1 = jnp.dot(x_bf, w1_ref[...], preferred_element_type=jnp.float32)
    h1 = jnp.maximum(h1 + b1_ref[...], 0.0)
    # Layer 2: (TB,512) @ (512,512) -> f32 acc, +b2, ReLU (operands bf16)
    h2 = jnp.dot(h1.astype(jnp.bfloat16), w2_ref[...],
                 preferred_element_type=jnp.float32)
    h2 = jnp.maximum(h2 + b2_ref[...], 0.0)
    # Layer 3: (TB,512) @ (512,128) -> f32 acc, +b3 (lane-dense; cols 10..127 zero)
    logits = jnp.dot(h2.astype(jnp.bfloat16), w3_ref[...],
                     preferred_element_type=jnp.float32)
    o_ref[...] = (logits + b3_ref[...]).astype(o_ref.dtype)


def _choose_tiling(batch, tb_max=1024):
    """Pick (TB, nb): even nb>=2 grid steps (v7x has 2 TensorCores), TB<=tb_max,
    sized from the batch so zero-row padding waste stays small."""
    def rup(x, m):
        return ((x + m - 1) // m) * m

    b_al = rup(max(batch, 1), 16)             # 16-sublane granularity (bf16 out)
    nb = max(2, -(-b_al // tb_max))           # >= 2 steps so both v7x TCs work
    if nb % 2:
        nb += 1                               # even split across the two cores
    tb = rup(-(-b_al // nb), 16)
    tb128 = rup(tb, 128)                      # prefer a 128-row M tile when the
    if tb128 * nb <= b_al + 128:              # extra zero-pad is < one stripe total
        tb = tb128
    nb = max(2, -(-b_al // tb))
    if nb % 2:
        nb += 1
    return tb, nb


def neural_network_forward(x_nchw, params, *, tb_max=1024):
    """x_nchw: (B, 1, 28, 28) float32. Returns logits (B, 10) float32."""
    w1, b1, w2, b2, w3, b3 = params
    B = x_nchw.shape[0]
    # nn.Flatten(): flatten everything except the batch dim (NCHW row-major).
    x = x_nchw.reshape(B, -1).astype(jnp.float32)             # (B, 784)
    K = x.shape[1]                                             # 784 (full-dim block)
    H1, H2 = w1.shape[1], w2.shape[1]                          # 512, 512
    N_PAD = 128                                                # lane-dense logits

    TB, nb = _choose_tiling(B, tb_max)
    B_pad = TB * nb
    if B_pad != B:                                             # single batch-row pad
        x = jnp.pad(x, ((0, B_pad - B), (0, 0)))

    # One-time weight prep (tiny vs. activations): bf16 operands, layer-3 padded.
    w1_bf = w1.astype(jnp.bfloat16)
    w2_bf = w2.astype(jnp.bfloat16)
    w3_bf = jnp.pad(w3, ((0, 0), (0, N_PAD - w3.shape[1]))).astype(jnp.bfloat16)
    b1r = b1.reshape(1, -1).astype(jnp.float32)
    b2r = b2.reshape(1, -1).astype(jnp.float32)
    b3r = jnp.pad(b3, ((0, N_PAD - b3.shape[0]),)).reshape(1, -1).astype(jnp.float32)

    flops = 2 * B_pad * (K * H1 + H1 * H2 + H2 * N_PAD)
    bytes_accessed = (
        x.size * 4                                             # f32 activations in
        + (w1_bf.size + w2_bf.size + w3_bf.size) * 2           # bf16 weights
        + (b1r.size + b2r.size + b3r.size) * 4                 # f32 biases
        + B_pad * N_PAD * 2                                    # bf16 logits out
    )

    # Weights/biases stay resident across all batch tiles (block index fixed).
    resident = lambda shape: pl.BlockSpec(shape, lambda i: (0, 0))

    out = pl.pallas_call(
        mlp_kernel,
        out_shape=jax.ShapeDtypeStruct((B_pad, N_PAD), jnp.bfloat16),
        grid=(nb,),
        in_specs=[
            pl.BlockSpec((TB, K), lambda i: (i, 0)),           # f32 activation tile
            resident(w1_bf.shape), resident(b1r.shape),
            resident(w2_bf.shape), resident(b2r.shape),
            resident(w3_bf.shape), resident(b3r.shape),
        ],
        out_specs=pl.BlockSpec((TB, N_PAD), lambda i: (i, 0)),
        compiler_params=pltpu.CompilerParams(
            dimension_semantics=("parallel",)),                # v7x: 2 TCs split batch tiles
        cost_estimate=pl.CostEstimate(
            flops=flops, transcendentals=0, bytes_accessed=bytes_accessed),
    )(x, w1_bf, b1r, w2_bf, b2r, w3_bf, b3r)

    return out[:B, :10].astype(jnp.float32)


def init_params(key):
    """Deterministic init matching nn.Linear shapes (stored as (in, out))."""
    k1, k2, k3, k4, k5, k6 = jax.random.split(key, 6)

    def linear_init(kw, kb, fan_in, fan_out):
        # PyTorch-style uniform(-1/sqrt(fan_in), 1/sqrt(fan_in))
        bound = 1.0 / jnp.sqrt(jnp.float32(fan_in))
        w = jax.random.uniform(kw, (fan_in, fan_out), jnp.float32, -bound, bound)
        b = jax.random.uniform(kb, (fan_out,), jnp.float32, -bound, bound)
        return w, b

    w1, b1 = linear_init(k1, k2, 28 * 28, 512)
    w2, b2 = linear_init(k3, k4, 512, 512)
    w3, b3 = linear_init(k5, k6, 512, 10)
    return (w1, b1, w2, b2, w3, b3)


if __name__ == "__main__":
    key = jax.random.PRNGKey(0)
    kx, kp = jax.random.split(key)

    B = 8
    x = jax.random.normal(kx, (B, 1, 28, 28), jnp.float32)     # NCHW, MNIST-like
    params = init_params(kp)

    logits = neural_network_forward(x, params)
    logits = jax.block_until_ready(logits)
    assert logits.shape == (B, 10)

    w1, b1, w2, b2, w3, b3 = params
    xf = x.reshape(B, -1)

    # Reference matching the kernel's numeric path (bf16 operands, f32 accum).
    def ref_bf16(xf):
        h = jnp.dot(xf.astype(jnp.bfloat16), w1.astype(jnp.bfloat16),
                    preferred_element_type=jnp.float32)
        h = jnp.maximum(h + b1, 0.0)
        h = jnp.dot(h.astype(jnp.bfloat16), w2.astype(jnp.bfloat16),
                    preferred_element_type=jnp.float32)
        h = jnp.maximum(h + b2, 0.0)
        h = jnp.dot(h.astype(jnp.bfloat16), w3.astype(jnp.bfloat16),
                    preferred_element_type=jnp.float32)
        return h + b3

    ref = ref_bf16(xf)
    assert jnp.allclose(logits, ref, atol=3e-2, rtol=3e-2)

    # Sanity check against the pure-f32 PyTorch-equivalent math (looser tol:
    # only differences are bf16 matmul operands and the bf16 logits store).
    ref32 = jnp.maximum(xf @ w1 + b1, 0.0)
    ref32 = jnp.maximum(ref32 @ w2 + b2, 0.0)
    ref32 = ref32 @ w3 + b3
    assert jnp.allclose(logits, ref32, atol=6e-2, rtol=6e-2)

    print("KERNEL_OK")
</pallas_src>

<mosaic_0001>
module attributes {stable_mosaic.version = 11 : i64} {
  func.func @mlp_kernel(%arg0: i32, %arg1: memref<16x784xf32, #tpu.memory_space<vmem>>, %arg2: memref<784x512xbf16, #tpu.memory_space<vmem>>, %arg3: memref<1x512xf32, #tpu.memory_space<vmem>>, %arg4: memref<512x512xbf16, #tpu.memory_space<vmem>>, %arg5: memref<1x512xf32, #tpu.memory_space<vmem>>, %arg6: memref<512x128xbf16, #tpu.memory_space<vmem>>, %arg7: memref<1x128xf32, #tpu.memory_space<vmem>>, %arg8: memref<16x128xbf16, #tpu.memory_space<vmem>>) attributes {dimension_semantics = [#tpu.dimension_semantics<parallel>], iteration_bounds = array<i64: 2>, scalar_prefetch = 0 : i64, scratch_operands = 0 : i64, tpu.core_type = #tpu.core_type<tc>, window_params = [{transform_indices = @transform_0, window_bounds = array<i64: 16, 784>}, {pipeline_mode = #tpu.pipeline_mode<synchronous>, transform_indices = @transform_1, window_bounds = array<i64: 784, 512>}, {pipeline_mode = #tpu.pipeline_mode<synchronous>, transform_indices = @transform_2, window_bounds = array<i64: 1, 512>}, {pipeline_mode = #tpu.pipeline_mode<synchronous>, transform_indices = @transform_3, window_bounds = array<i64: 512, 512>}, {pipeline_mode = #tpu.pipeline_mode<synchronous>, transform_indices = @transform_4, window_bounds = array<i64: 1, 512>}, {pipeline_mode = #tpu.pipeline_mode<synchronous>, transform_indices = @transform_5, window_bounds = array<i64: 512, 128>}, {pipeline_mode = #tpu.pipeline_mode<synchronous>, transform_indices = @transform_6, window_bounds = array<i64: 1, 128>}, {transform_indices = @transform_7, window_bounds = array<i64: 16, 128>}]} {
    %c0 = arith.constant 0 : index
    %c0_0 = arith.constant 0 : index
    %0 = vector.load %arg1[%c0, %c0_0] : memref<16x784xf32, #tpu.memory_space<vmem>>, vector<16x784xf32>
    %1 = arith.truncf %0 : vector<16x784xf32> to vector<16x784xbf16>
    %c0_1 = arith.constant 0 : index
    %c0_2 = arith.constant 0 : index
    %2 = vector.load %arg2[%c0_1, %c0_2] : memref<784x512xbf16, #tpu.memory_space<vmem>>, vector<784x512xbf16>
    %cst = arith.constant dense<0.000000e+00> : vector<16x512xf32>
    %3 = tpu.matmul %1, %2, %cst {dimension_numbers = #tpu.dot_dimension_numbers<[1], [0], [0], [1], [0, 0, 1, 1], [], []>} : vector<16x784xbf16>, vector<784x512xbf16>, vector<16x512xf32> -> vector<16x512xf32>
    %c0_3 = arith.constant 0 : index
    %c0_4 = arith.constant 0 : index
    %4 = vector.load %arg3[%c0_3, %c0_4] : memref<1x512xf32, #tpu.memory_space<vmem>>, vector<1x512xf32>
    %5 = vector.broadcast %4 : vector<1x512xf32> to vector<16x512xf32>
    %6 = arith.addf %3, %5 : vector<16x512xf32>
    %cst_5 = arith.constant 0.000000e+00 : f32
    %7 = vector.broadcast %cst_5 : f32 to vector<16x512xf32>
    %8 = arith.maximumf %6, %7 : vector<16x512xf32>
    %9 = arith.truncf %8 : vector<16x512xf32> to vector<16x512xbf16>
    %c0_6 = arith.constant 0 : index
    %c0_7 = arith.constant 0 : index
    %10 = vector.load %arg4[%c0_6, %c0_7] : memref<512x512xbf16, #tpu.memory_space<vmem>>, vector<512x512xbf16>
    %cst_8 = arith.constant dense<0.000000e+00> : vector<16x512xf32>
    %11 = tpu.matmul %9, %10, %cst_8 {dimension_numbers = #tpu.dot_dimension_numbers<[1], [0], [0], [1], [0, 0, 1, 1], [], []>} : vector<16x512xbf16>, vector<512x512xbf16>, vector<16x512xf32> -> vector<16x512xf32>
    %c0_9 = arith.constant 0 : index
    %c0_10 = arith.constant 0 : index
    %12 = vector.load %arg5[%c0_9, %c0_10] : memref<1x512xf32, #tpu.memory_space<vmem>>, vector<1x512xf32>
    %13 = vector.broadcast %12 : vector<1x512xf32> to vector<16x512xf32>
    %14 = arith.addf %11, %13 : vector<16x512xf32>
    %cst_11 = arith.constant 0.000000e+00 : f32
    %15 = vector.broadcast %cst_11 : f32 to vector<16x512xf32>
    %16 = arith.maximumf %14, %15 : vector<16x512xf32>
    %17 = arith.truncf %16 : vector<16x512xf32> to vector<16x512xbf16>
    %c0_12 = arith.constant 0 : index
    %c0_13 = arith.constant 0 : index
    %18 = vector.load %arg6[%c0_12, %c0_13] : memref<512x128xbf16, #tpu.memory_space<vmem>>, vector<512x128xbf16>
    %cst_14 = arith.constant dense<0.000000e+00> : vector<16x128xf32>
    %19 = tpu.matmul %17, %18, %cst_14 {dimension_numbers = #tpu.dot_dimension_numbers<[1], [0], [0], [1], [0, 0, 1, 1], [], []>} : vector<16x512xbf16>, vector<512x128xbf16>, vector<16x128xf32> -> vector<16x128xf32>
    %c0_15 = arith.constant 0 : index
    %c0_16 = arith.constant 0 : index
    %20 = vector.load %arg7[%c0_15, %c0_16] : memref<1x128xf32, #tpu.memory_space<vmem>>, vector<1x128xf32>
    %21 = vector.broadcast %20 : vector<1x128xf32> to vector<16x128xf32>
    %22 = arith.addf %19, %21 : vector<16x128xf32>
    %23 = arith.truncf %22 : vector<16x128xf32> to vector<16x128xbf16>
    %c0_17 = arith.constant 0 : index
    %c0_18 = arith.constant 0 : index
    %24 = vector.load %arg8[%c0_17, %c0_18] : memref<16x128xbf16, #tpu.memory_space<vmem>>, vector<16x128xbf16>
    tpu.vector_store %arg8[%c0_17, %c0_18], %23 {strides = array<i32>} : memref<16x128xbf16, #tpu.memory_space<vmem>>, vector<16x128xbf16>,
    return
  }
  func.func @transform_0(%arg0: i32) -> (i32, i32) {
    %c0_i32 = arith.constant 0 : i32
    %c0_i32_0 = arith.constant 0 : i32
    return %arg0, %c0_i32 : i32, i32
  }
  func.func @transform_1(%arg0: i32) -> (i32, i32) {
    %c0_i32 = arith.constant 0 : i32
    %c0_i32_0 = arith.constant 0 : i32
    %c0_i32_1 = arith.constant 0 : i32
    return %c0_i32, %c0_i32_0 : i32, i32
  }
  func.func @transform_2(%arg0: i32) -> (i32, i32) {
    %c0_i32 = arith.constant 0 : i32
    %c0_i32_0 = arith.constant 0 : i32
    %c0_i32_1 = arith.constant 0 : i32
    return %c0_i32, %c0_i32_0 : i32, i32
  }
  func.func @transform_3(%arg0: i32) -> (i32, i32) {
    %c0_i32 = arith.constant 0 : i32
    %c0_i32_0 = arith.constant 0 : i32
    %c0_i32_1 = arith.constant 0 : i32
    return %c0_i32, %c0_i32_0 : i32, i32
  }
  func.func @transform_4(%arg0: i32) -> (i32, i32) {
    %c0_i32 = arith.constant 0 : i32
    %c0_i32_0 = arith.constant 0 : i32
    %c0_i32_1 = arith.constant 0 : i32
    return %c0_i32, %c0_i32_0 : i32, i32
  }
  func.func @transform_5(%arg0: i32) -> (i32, i32) {
    %c0_i32 = arith.constant 0 : i32
    %c0_i32_0 = arith.constant 0 : i32
    %c0_i32_1 = arith.constant 0 : i32
    return %c0_i32, %c0_i32_0 : i32, i32
  }
  func.func @transform_6(%arg0: i32) -> (i32, i32) {
    %c0_i32 = arith.constant 0 : i32
    %c0_i32_0 = arith.constant 0 : i32
    %c0_i32_1 = arith.constant 0 : i32
    return %c0_i32, %c0_i32_0 : i32, i32
  }
  func.func @transform_7(%arg0: i32) -> (i32, i32) {
    %c0_i32 = arith.constant 0 : i32
    %c0_i32_0 = arith.constant 0 : i32
    return %arg0, %c0_i32 : i32, i32
  }
}

</mosaic_0001>

<bundles_post_ra>
// kernel: tpu_custom_call.1
= control target key start
LH: loop header
LB: loop body
LE: loop exit
PB: predicated region body
PF: predicated region fallthrough
CT: control target
= control target key end

     0   :  { %s5996_s0 = inlined_call_operand.hbm [shape: f32[32,784], index: 0, kind: input, shape index: {}]   ;;  %s5997_s1 = inlined_call_operand.hbm [shape: bf16[784,512], index: 1, kind: input, shape index: {}]   ;;  %s5998_s2 = inlined_call_operand.hbm [shape: f32[1,512], index: 2, kind: input, shape index: {}]   ;;  %s5999_s3 = inlined_call_operand.hbm [shape: bf16[512,512], index: 3, kind: input, shape index: {}]   ;;  %s6000_s4 = inlined_call_operand.hbm [shape: f32[1,512], index: 4, kind: input, shape index: {}]   ;;  %s6001_s5 = inlined_call_operand.hbm [shape: bf16[512,128], index: 5, kind: input, shape index: {}]   ;;  %s6002_s6 = inlined_call_operand.vmem [shape: f32[1,128], index: 6, kind: input, shape index: {}]   ;;  %s6003_s7 = inlined_call_operand.hbm [shape: bf16[32,128], index: 7, kind: output, shape index: {}]  }
   0x1   :  { %6004 = sst [smem:[#allocation19_spill]] %s5997_s1 }
   0x2   :  { %6005 = sst [smem:[#allocation20_spill]] %s5998_s2 }
   0x3   :  { %6006 = sst [smem:[#allocation21_spill]] %s5999_s3 }
   0x4   :  { %6007 = sst [smem:[#allocation22_spill]] %s6000_s4 }
   0x5   :  { %12 = vsyncpa [#allocation3], 0 }
   0x6   :  { %14 = vsyncpa [#allocation3 + $0x1], 0 }
   0x7   :  { %15 = vsyncpa [#allocation6], 0 }
   0x8   :  { %16 = vsyncpa [#allocation9], 0 }
   0x9   :  { %17 = vsyncpa [#allocation12], 0 }
   0xa   :  { %18 = vsyncpa [#allocation4], 0 }
   0xb   :  { %20 = vsyncpa [#allocation4 + $0x1], 0  ;;  %s5703_s24 = smov 0   ;;  %s5705_s25 = smov 0  }
   0xc   :  { %s5707_s26 = smov 0   ;;  %s5709_s27 = smov 0  }
   0xd LB: > { %s6008_s1 = sld [smem:[#allocation19_spill]]  ;;  %s5727_s8 = sadd.s32 4294967295, %s5648_s27   ;;  %s5648_s27 = sphi %s5709_s27, %s6022_s27   ;;  %s5644_s26 = sphi %s5707_s26, %s6021_s26   ;;  %s5640_s25 = sphi %s5705_s25, %s6020_s25   ;;  %s5636_s24 = sphi %s5703_s24, %s6019_s24  }
   0xe   : > { %p3469_p0 = scmp.ge.s32.totalorder %s5648_s27, 1  ;;  %p47_p1 = scmp.eq.s32.totalorder %s5727_s8, 0 }
   0xf   : > { %p209_p2 = scmp.lt.s32.totalorder %s5648_s27, 3  ;;  %s5650_s10 = smov [#allocation5]  }
  0x10   : > { %s222_s11 = sshll.u32 %s5650_s10, 4  ;;  %s6010_s3 = sld [smem:[#allocation21_spill]]  ;;  %s223_s11 = int_to_ptr.vmem [resolvable:$true] %s222_s11 }
  0x11   : > { %p5732_p3 = pnand %p3469_p0, %p209_p2  ;;  %s6012_s2 = sld [smem:[#allocation20_spill]] }
  0x12   : > { %s5651_s19 = smov [#allocation8]   ;;  %s5652_s21 = smov 256  }
  0x13   : > { %s220_s30 = sshll.u32 %s6008_s1, 4  ;;  %p5308_p4 = pneg %p5732_p3  ;;  %s221_s30 = int_to_ptr.hbm [resolvable:$true] %s220_s30 }
  0x14   : > { %s248_s20 = sshll.u32 %s5651_s19, 4  ;;  %s5653_s22 = smov 16   ;;  %s249_s20 = int_to_ptr.vmem [resolvable:$true] %s248_s20 }
  0x15   : > { %p5744_p6 = pnand %p5308_p4, %p47_p1  ;;  %s6013_s4 = sld [smem:[#allocation22_spill]] }
  0x16   : > { %s246_s14 = sshll.u32 %s6010_s3, 4  ;;  %s5654_s10 = smov [#allocation7]   ;;  %s247_s14 = int_to_ptr.hbm [resolvable:$true] %s246_s14 }
  0x17   : > { %s235_s18 = sshll.u32 %s6012_s2, 4  ;;  %s237_s12 = sshll.u32 %s5654_s10, 4  ;;  %s236_s18 = int_to_ptr.hbm [resolvable:$true] %s235_s18  ;;  %s238_s12 = int_to_ptr.vmem [resolvable:$true] %s237_s12 }
  0x18   : > { %5311 = dma.hbm_to_vmem [thread:$0]  (!%p5744_p6), %s221_s30, 25088, %s223_s11, [#allocation6], %s5652_s21, %s5652_s21, %s5653_s22  }
  0x19   : > { %5317 = dma.hbm_to_vmem [thread:$0]  (!%p5744_p6), %s247_s14, 16384, %s249_s20, [#allocation9], %s5652_s21, %s5652_s21, %s5653_s22  }
  0x1a   : > { %5314 = dma.hbm_to_vmem [thread:$0]  (!%p5744_p6), %s236_s18, 64, %s238_s12, [#allocation6]  }
  0x1b   : > { %s261_s29 = sshll.u32 %s6013_s4, 4  ;;  %s5655_s30 = smov [#allocation10]   ;;  %s262_s29 = int_to_ptr.hbm [resolvable:$true] %s261_s29 }
  0x1c   : > { %s263_s11 = sshll.u32 %s5655_s30, 4  ;;  %s272_s16 = sshll.u32 %s6001_s5, 4  ;;  %s264_s11 = int_to_ptr.vmem [resolvable:$true] %s263_s11  ;;  %s273_s16 = int_to_ptr.hbm [resolvable:$true] %s272_s16 }
  0x1d   : > { %5320 = dma.hbm_to_vmem [thread:$0]  (!%p5744_p6), %s262_s29, 64, %s264_s11, [#allocation9]  }
  0x1e   : > { %s5656_s17 = smov [#allocation11]   ;;  %s5657_s19 = smov 64  }
  0x1f   : > { %s274_s18 = sshll.u32 %s5656_s17, 4  ;;  %s5658_s20 = smov 4   ;;  %s275_s18 = int_to_ptr.vmem [resolvable:$true] %s274_s18 }
  0x20   : > { %5323 = dma.hbm_to_vmem [thread:$0]  (!%p5744_p6), %s273_s16, 4096, %s275_s18, [#allocation12], %s5657_s19, %s5657_s19, %s5658_s20  }
  0x21   : > { %s3468_s21 = sadd.s32 4294967294, %s5648_s27   ;;  %s5769_s22 = sadd.s32 1, %s5648_s27  }
  0x22   : > { %s33_s23 = sadd.s32 1, %s5644_s26  ;;  %s30_s28 = ssub.s32 %s5648_s27, %s5769_s22 }
  0x23   : > { %p40_p7 = scmp.ne.s32.totalorder %s5644_s26, %s5640_s25  ;;  %p31_p8 = scmp.eq.s32.totalorder %s30_s28, 0 }
  0x24   : > { %p41_p9 = scmp.eq.s32.totalorder %s5648_s27, 0  ;;  %p46_p10 = scmp.ne.s32.totalorder %s5640_s25, %s5636_s24 }
  0x25   : > { %p196_p11 = scmp.eq.s32.totalorder %s5727_s8, 1  ;;  %p202_p2 = scmp.eq.s32.totalorder %s3468_s21, 1 }
  0x26   : > { %s5781_s29 = scalar_select %p31_p8, %s5644_s26, %s33_s23  }
  0x27   : > { %p42_p12 = por %p41_p9, %p40_p7  ;;  %p5785_p13 = por %p47_p1, %p46_p10 }
  0x28   : > { %p5789_p0 = por %p196_p11, %p40_p7  ;;  %p5337_p4 = scmp.lt.s32.totalorder %s5648_s27, 2 }
  0x29   : > { %s291_s12 = sand.u32 1, %s5644_s26   ;;  %p5795_p6 = por %p202_p2, %p46_p10 }
  0x2a   : > { %s5281_s11 = smul.u32 112, %s291_s12  ;;  %p5799_p8 = pnand %p5337_p4, %p42_p12 }
  0x2b   : > { %s5282_s14 = smul.u32 112, %s5648_s27  ;;  %s292_s23 = scalar_lea.sflag [#allocation3], %s291_s12 }
  0x2c   : > { %s295_s19 = scalar_lea.vmem [#allocation2], %s5281_s11  ;;  %p5544_p9 = pneg %p5799_p8 }
  0x2d   : > { %s301_s18 = scalar_lea.hbm %s5996_s0, %s5282_s14  ;;  %s304_s20 = sshll.u32 %s295_s19, 4  ;;  %s305_s20 = int_to_ptr.vmem [resolvable:$true] %s304_s20 }
  0x2e   : > { %s302_s21 = sshll.u32 %s301_s18, 4  ;;  %s5547_s4 = scalar_lea.hbm %s5996_s0, 224  ;;  %s303_s21 = int_to_ptr.hbm [resolvable:$true] %s302_s21 }
  0x2f   : > { %s5540_s28 = sshra.s32 %s303_s21, 4  ;;  %s5541_s28 = int_to_ptr.hbm [resolvable:$true] %s5540_s28 }
  0x30   : > { %s5542_s1 = scalar_lea.hbm %s5541_s28, 112  ;;  %p5548_p12 = scmp.lt.s32.totalorder %s5541_s28, %s5996_s0 }
  0x31   : > { %p5543_p7 = scmp.ne.s32.totalorder %s5541_s28, %s5542_s1  ;;  %p5549_p2 = scmp.lt.s32.totalorder %s5547_s4, %s5542_s1 }
  0x33   : > { %p5545_p10 = pnand %p5544_p9, %p5543_p7  ;;  %p5550_p4 = por %p5549_p2, %p5548_p12 }
  0x35   : > { %p5546_p11 = pneg %p5545_p10 }
  0x37   : > { %p5551_p5 = pnand %p5550_p4, %p5546_p11 }
  0x39   : > { %5554 = shalt.err (!%p5551_p5)
}
  0x3a   : > { %s5659_s12 = smov 896   ;;  %s5660_s11 = smov 56  }
  0x3b   : > { %5327 = dma.hbm_to_vmem [thread:$0]  (!%p5799_p8), %s303_s21, 1792, %s305_s20, %s292_s23, %s5659_s12, %s5659_s12, %s5660_s11  }
  0x3c   : > { %316 = sbr.rel (%p5732_p3) target bundleno = 771 (0x303), region = 48  ;;  %s5820_s2 = sand.u32 (!%p5732_p3), 1, %s5640_s25  }
  0x3d   : > { %s5283_s3 = smul.u32 (!%p5732_p3), 112, %s5820_s2  ;;  %s319_s17 = scalar_lea.sflag (!%p5732_p3), [#allocation3], %s5820_s2 }
  0x3f   : > { %s5824_s1 = scalar_lea.vmem (!%p5732_p3), [#allocation2], %s5283_s3 }
  0x41   : > { %5615 = dma.done.wait (%p5785_p13), %s319_s17, 1792  }
  0x42   : > { %5617 = vsyncadd (%p5785_p13), %s319_s17, 4294965504 }
  0x43   : > { %5619 = dma.done.wait (%p47_p1), [#allocation6], 25152  }
  0x44   : > { %5621 = vsyncadd (%p47_p1), [#allocation6], 4294942144 }
  0x45   : > { %5623 = dma.done.wait (%p47_p1), [#allocation9], 16448  }
  0x46   : > { %5625 = vsyncadd (%p47_p1), [#allocation9], 4294950848 }
  0x47   : > { %5627 = dma.done.wait (%p47_p1), [#allocation12], 4096  }
  0x48   : > { %5629 = vsyncadd (%p47_p1), [#allocation12], 4294963200  ;;  %v3600_v0 = vld [vmem:[#allocation5 + $0xe0] sm:$0xf]  ;;  %v4949_v1 = vld [vmem:[#allocation5 + $0xec] sm:$0xf0] }
  0x49   : > { %v3728_v2 = vld [vmem:[#allocation5 + $0x1e0] sm:$0xf]  ;;  %v3601_v3 = vor.u32 %v4949_v1, %v3600_v0  ;;  %v4981_v4 = vld [vmem:[#allocation5 + $0x1ec] sm:$0xf0]  ;;  %vm1589_vm0 = vcmask 130048   ;;  %s3485_s15 = sshll.u32 %s5820_s2, 3 }
  0x4a   : > { %v3856_v5 = vld [vmem:[#allocation5 + $0x2e0] sm:$0xf]  ;;  %v5013_v6 = vld [vmem:[#allocation5 + $0x2ec] sm:$0xf0]  ;;  %v3729_v7 = vor.u32 %v4981_v4, %v3728_v2  ;;  %s5275_s13 = sshll.u32 %s5727_s8, 3  ;;  %s378_s21 = scalar_lea.vmem [#allocation13], %s3485_s15 }
  0x4b   : > { %v3857_v8 = vor.u32 %v5013_v6, %v3856_v5  ;;  %v3984_v9 = vld [vmem:[#allocation5 + $0x3e0] sm:$0xf]  ;;  %v5045_v10 = vld [vmem:[#allocation5 + $0x3ec] sm:$0xf0]  ;;  %1593 = vmatpush.bf16.msra.mxu0 %v3601_v3  ;;  %s3343_s20 = scalar_lea.hbm %s6003_s7, %s5275_s13  ;;  %s3344_s23 = sshll.u32 %s378_s21, 4  ;;  %s3345_s23 = int_to_ptr.vmem [resolvable:$true] %s3344_s23 }
  0x4c   : > { %v3584_v11 = vld [vmem:[#allocation5 + $0xc0] sm:$0xf]  ;;  %v3985_v12 = vor.u32 %v5045_v10, %v3984_v9  ;;  %v4945_v13 = vld [vmem:[#allocation5 + $0xcc] sm:$0xf0]  ;;  %1607 = vmatpush.bf16.msra.mxu1 %v3729_v7  ;;  %s3346_s28 = sshll.u32 %s3343_s20, 4  ;;  %s3332_s8 = scalar_lea.sflag [#allocation4], %s5820_s2  ;;  %s3347_s28 = int_to_ptr.hbm [resolvable:$true] %s3346_s28 }
  0x4d   : > { %v3712_v14 = vld [vmem:[#allocation5 + $0x1c0] sm:$0xf]  ;;  %v4977_v15 = vld [vmem:[#allocation5 + $0x1cc] sm:$0xf0]  ;;  %1621 = vmatpush.bf16.msra.mxu2 %v3857_v8  ;;  %v3585_v16 = vor.u32 %v4945_v13, %v3584_v11  ;;  %s5584_s16 = sshra.s32 %s3347_s28, 4  ;;  %s5590_s3 = scalar_lea.hbm %s6003_s7, 16  ;;  %s5585_s16 = int_to_ptr.hbm [resolvable:$true] %s5584_s16 }
  0x4e   : > { %v3713_v17 = vor.u32 %v4977_v15, %v3712_v14  ;;  %v3840_v18 = vld [vmem:[#allocation5 + $0x2c0] sm:$0xf]  ;;  %v5009_v19 = vld [vmem:[#allocation5 + $0x2cc] sm:$0xf0]  ;;  %1635 = vmatpush.bf16.msra.mxu3 %v3985_v12  ;;  %s5586_s14 = scalar_lea.hbm %s5585_s16, 8  ;;  %p5591_p13 = scmp.lt.s32.totalorder %s5585_s16, %s6003_s7 }
  0x4f   : > { %v3968_v20 = vld [vmem:[#allocation5 + $0x3c0] sm:$0xf]  ;;  %v3841_v21 = vor.u32 %v5009_v19, %v3840_v18  ;;  %v5041_v22 = vld [vmem:[#allocation5 + $0x3cc] sm:$0xf0]  ;;  %1594 = vmatpush.bf16.msra.mxu0 %v3585_v16  ;;  %p5587_p1 = scmp.ne.s32.totalorder %s5585_s16, %s5586_s14  ;;  %p5592_p8 = scmp.lt.s32.totalorder %s5590_s3, %s5586_s14 }
  0x50   : > { %v3568_v23 = vld [vmem:[#allocation5 + $0xa0] sm:$0xf]  ;;  %v4941_v24 = vld [vmem:[#allocation5 + $0xac] sm:$0xf0]  ;;  %v3969_v25 = vor.u32 %v5041_v22, %v3968_v20  ;;  %1608 = vmatpush.bf16.msra.mxu1 %v3713_v17 }
  0x51   : > { %v3696_v26 = vld [vmem:[#allocation5 + $0x1a0] sm:$0xf]  ;;  %v4973_v27 = vld [vmem:[#allocation5 + $0x1ac] sm:$0xf0]  ;;  %v3569_v29 = vor.u32 %v4941_v24, %v3568_v23  ;;  %1622 = vmatpush.bf16.msra.mxu2 %v3841_v21  ;;  %p5588_p3 = pnand %p5587_p1, %p5789_p0  ;;  %p5593_p7 = por %p5592_p8, %p5591_p13 }
  0x52   : > { %v3824_v28 = vld [vmem:[#allocation5 + $0x2a0] sm:$0xf]  ;;  %v5005_v30 = vld [vmem:[#allocation5 + $0x2ac] sm:$0xf0]  ;;  %v3697_v33 = vor.u32 %v4973_v27, %v3696_v26  ;;  %1636 = vmatpush.bf16.msra.mxu3 %v3969_v25 }
  0x53   : > { %v3952_v31 = vld [vmem:[#allocation5 + $0x3a0] sm:$0xf]  ;;  %v5037_v32 = vld [vmem:[#allocation5 + $0x3ac] sm:$0xf0]  ;;  %v3825_v34 = vor.u32 %v5005_v30, %v3824_v28  ;;  %1595 = vmatpush.bf16.msra.mxu0 %v3569_v29  ;;  %p5589_p5 = pneg %p5588_p3 }
  0x54   : > { %v3552_v35 = vld [vmem:[#allocation5 + $0x80] sm:$0xf]  ;;  %v4937_v36 = vld [vmem:[#allocation5 + $0x8c] sm:$0xf0]  ;;  %v3953_v38 = vor.u32 %v5037_v32, %v3952_v31  ;;  %1609 = vmatpush.bf16.msra.mxu1 %v3697_v33  ;;  %v4947_v32 = vld [vmem:[#allocation5 + $0xe4] sm:$0xf] }
  0x55   : > { %v3680_v37 = vld [vmem:[#allocation5 + $0x180] sm:$0xf]  ;;  %v4969_v39 = vld [vmem:[#allocation5 + $0x18c] sm:$0xf0]  ;;  %v3553_v44 = vor.u32 %v4937_v36, %v3552_v35  ;;  %1623 = vmatpush.bf16.msra.mxu2 %v3825_v34  ;;  %v3602_v33 = vld [vmem:[#allocation5 + $0xf0] sm:$0xf0]  ;;  %p5594_p9 = pnand %p5593_p7, %p5589_p5 }
  0x56   : > { %v3808_v40 = vld [vmem:[#allocation5 + $0x280] sm:$0xf]  ;;  %v5001_v41 = vld [vmem:[#allocation5 + $0x28c] sm:$0xf0]  ;;  %v3681_v45 = vor.u32 %v4969_v39, %v3680_v37  ;;  %1637 = vmatpush.bf16.msra.mxu3 %v3953_v38  ;;  %v391_v36 = vld [vmem:[%s5824_s1 + $0x48] sm:$0xff] }
  0x57   : > { %v3936_v42 = vld [vmem:[#allocation5 + $0x380] sm:$0xf]  ;;  %v5033_v43 = vld [vmem:[#allocation5 + $0x38c] sm:$0xf0]  ;;  %v3809_v46 = vor.u32 %v5001_v41, %v3808_v40  ;;  %1596 = vmatpush.bf16.msra.mxu0 %v3553_v44  ;;  %v4979_v41 = vld [vmem:[#allocation5 + $0x1e4] sm:$0xf] }
  0x58   : > { %v3536_v47 = vld [vmem:[#allocation5 + $0x60] sm:$0xf]  ;;  %v4933_v48 = vld [vmem:[#allocation5 + $0x6c] sm:$0xf0]  ;;  %v3937_v50 = vor.u32 %v5033_v43, %v3936_v42  ;;  %1610 = vmatpush.bf16.msra.mxu1 %v3681_v45  ;;  %v389_v43 = vld [vmem:[%s5824_s1 + $0x38] sm:$0xff] }
  0x59   : > { %v3664_v49 = vld [vmem:[#allocation5 + $0x160] sm:$0xf]  ;;  %v4965_v51 = vld [vmem:[#allocation5 + $0x16c] sm:$0xf0]  ;;  %v3537_v56 = vor.u32 %v4933_v48, %v3536_v47  ;;  %1624 = vmatpush.bf16.msra.mxu2 %v3809_v46  ;;  %v3730_v46 = vld [vmem:[#allocation5 + $0x1f0] sm:$0xf0] }
  0x5a   : > { %v3792_v52 = vld [vmem:[#allocation5 + $0x260] sm:$0xf]  ;;  %v4997_v53 = vld [vmem:[#allocation5 + $0x26c] sm:$0xf0]  ;;  %v3665_v57 = vor.u32 %v4965_v51, %v3664_v49  ;;  %1638 = vmatpush.bf16.msra.mxu3 %v3937_v50  ;;  %v385_v47 = vld [vmem:[%s5824_s1 + $0x18] sm:$0xff]  ;;  %v3605_v50 = vor.u32 %v4947_v32, %v3602_v33 }
  0x5b   : > { %v3920_v54 = vld [vmem:[#allocation5 + $0x360] sm:$0xf]  ;;  %v5029_v55 = vld [vmem:[#allocation5 + $0x36c] sm:$0xf0]  ;;  %v3793_v58 = vor.u32 %v4997_v53, %v3792_v52  ;;  %1597 = vmatpush.bf16.msra.mxu0 %v3537_v56 }
  0x5c   : > { %v3520_v59 = vld [vmem:[#allocation5 + $0x40] sm:$0xf]  ;;  %v4929_v60 = vld [vmem:[#allocation5 + $0x4c] sm:$0xf0]  ;;  %v3921_v62 = vor.u32 %v5029_v55, %v3920_v54  ;;  %1611 = vmatpush.bf16.msra.mxu1 %v3665_v57  ;;  %v4943_v57 = vld [vmem:[#allocation5 + $0xc4] sm:$0xf] }
  0x5d   : > { %v3648_v61 = vld [vmem:[#allocation5 + $0x140] sm:$0xf]  ;;  %v4961_v63 = vld [vmem:[#allocation5 + $0x14c] sm:$0xf0]  ;;  %v3521_v4 = vor.u32 %v4929_v60, %v3520_v59  ;;  %1625 = vmatpush.bf16.msra.mxu2 %v3793_v58  ;;  %v3586_v58 = vld [vmem:[#allocation5 + $0xd0] sm:$0xf0] }
  0x5e   : > { %v3776_v0 = vld [vmem:[#allocation5 + $0x240] sm:$0xf]  ;;  %v4993_v1 = vld [vmem:[#allocation5 + $0x24c] sm:$0xf0]  ;;  %v3649_v6 = vor.u32 %v4961_v63, %v3648_v61  ;;  %1639 = vmatpush.bf16.msra.mxu3 %v3921_v62  ;;  %v383_v61 = vld [vmem:[%s5824_s1 + $0x8] sm:$0xff]  ;;  %v3733_v63 = vor.u32 %v4979_v41, %v3730_v46 }
  0x5f   : > { %v3904_v2 = vld [vmem:[#allocation5 + $0x340] sm:$0xf]  ;;  %v5025_v3 = vld [vmem:[#allocation5 + $0x34c] sm:$0xf0]  ;;  %v3777_v7 = vor.u32 %v4993_v1, %v3776_v0  ;;  %1598 = vmatpush.bf16.msra.mxu0 %v3521_v4  ;;  %v4975_v1 = vld [vmem:[#allocation5 + $0x1c4] sm:$0xf]  ;;  %v3589_v4 = vor.u32 %v4943_v57, %v3586_v58 }
  0x60   : > { %v3504_v5 = vld [vmem:[#allocation5 + $0x20] sm:$0xf]  ;;  %v4925_v8 = vld [vmem:[#allocation5 + $0x2c] sm:$0xf0]  ;;  %v3905_v11 = vor.u32 %v5025_v3, %v3904_v2  ;;  %1612 = vmatpush.bf16.msra.mxu1 %v3649_v6  ;;  %v3714_v2 = vld [vmem:[#allocation5 + $0x1d0] sm:$0xf0] }
  0x61   : > { %v3632_v9 = vld [vmem:[#allocation5 + $0x120] sm:$0xf]  ;;  %v4957_v10 = vld [vmem:[#allocation5 + $0x12c] sm:$0xf0]  ;;  %v3505_v18 = vor.u32 %v4925_v8, %v3504_v5  ;;  %1626 = vmatpush.bf16.msra.mxu2 %v3777_v7  ;;  %v3666_v41 = vld [vmem:[#allocation5 + $0x170] sm:$0xf0] }
  0x62   : > { %v3760_v12 = vld [vmem:[#allocation5 + $0x220] sm:$0xf]  ;;  %v4989_v13 = vld [vmem:[#allocation5 + $0x22c] sm:$0xf0]  ;;  %v3633_v23 = vor.u32 %v4957_v10, %v3632_v9  ;;  %1640 = vmatpush.bf16.msra.mxu3 %v3905_v11  ;;  %v4939_v10 = vld [vmem:[#allocation5 + $0xa4] sm:$0xf] }
  0x63   : > { %v3888_v14 = vld [vmem:[#allocation5 + $0x320] sm:$0xf]  ;;  %v5021_v15 = vld [vmem:[#allocation5 + $0x32c] sm:$0xf0]  ;;  %v3761_v24 = vor.u32 %v4989_v13, %v3760_v12  ;;  %1599 = vmatpush.bf16.msra.mxu0 %v3505_v18  ;;  %v3570_v11 = vld [vmem:[#allocation5 + $0xb0] sm:$0xf0]  ;;  %v3717_v12 = vor.u32 %v4975_v1, %v3714_v2 }
  0x64   : > { %v3488_v16 = vld [vmem:[#allocation5] sm:$0xf]  ;;  %v4921_v17 = vld [vmem:[#allocation5 + $0xc] sm:$0xf0]  ;;  %v3889_v28 = vor.u32 %v5021_v15, %v3888_v14  ;;  %1613 = vmatpush.bf16.msra.mxu1 %v3633_v23  ;;  %v4971_v14 = vld [vmem:[#allocation5 + $0x1a4] sm:$0xf] }
  0x65   : > { %v3616_v19 = vld [vmem:[#allocation5 + $0x100] sm:$0xf]  ;;  %v4953_v20 = vld [vmem:[#allocation5 + $0x10c] sm:$0xf0]  ;;  %v3489_v35 = vor.u32 %v4921_v17, %v3488_v16  ;;  %1627 = vmatpush.bf16.msra.mxu2 %v3761_v24  ;;  %v3698_v15 = vld [vmem:[#allocation5 + $0x1b0] sm:$0xf0]  ;;  %v3573_v17 = vor.u32 %v4939_v10, %v3570_v11 }
  0x66   : > { %v3744_v21 = vld [vmem:[#allocation5 + $0x200] sm:$0xf]  ;;  %v4985_v22 = vld [vmem:[#allocation5 + $0x20c] sm:$0xf0]  ;;  %v3617_v39 = vor.u32 %v4953_v20, %v3616_v19  ;;  %1641 = vmatpush.bf16.msra.mxu3 %v3889_v28  ;;  %v3554_v23 = vld [vmem:[#allocation5 + $0x90] sm:$0xf0]  ;;  %v3701_v24 = vor.u32 %v4971_v14, %v3698_v15 }
  0x67   : > { %v3872_v25 = vld [vmem:[#allocation5 + $0x300] sm:$0xf]  ;;  %v5017_v26 = vld [vmem:[#allocation5 + $0x30c] sm:$0xf0]  ;;  %v3745_v40 = vor.u32 %v4985_v22, %v3744_v21  ;;  %1600 = vmatpush.bf16.msra.mxu0 %v3489_v35  ;;  %v4935_v22 = vld [vmem:[#allocation5 + $0x84] sm:$0xf] }
  0x68   : > { %v4112_v27 = vld [vmem:[#allocation5 + $0x4e0] sm:$0xf]  ;;  %v5077_v29 = vld [vmem:[#allocation5 + $0x4ec] sm:$0xf0]  ;;  %v3873_v44 = vor.u32 %v5017_v26, %v3872_v25  ;;  %1614 = vmatpush.bf16.msra.mxu1 %v3617_v39  ;;  %v4967_v26 = vld [vmem:[#allocation5 + $0x184] sm:$0xf] }
  0x69   : > { %v4240_v30 = vld [vmem:[#allocation5 + $0x5e0] sm:$0xf]  ;;  %v5109_v31 = vld [vmem:[#allocation5 + $0x5ec] sm:$0xf0]  ;;  %v4113_v45 = vor.u32 %v5077_v29, %v4112_v27  ;;  %1628 = vmatpush.bf16.msra.mxu2 %v3745_v40  ;;  %v3682_v27 = vld [vmem:[#allocation5 + $0x190] sm:$0xf0]  ;;  %v3557_v29 = vor.u32 %v4935_v22, %v3554_v23 }
  0x6a   : > { %v384_v34 = vld [vmem:[%s5824_s1 + $0x10] sm:$0xff]  ;;  %v382_v42 = vld [vmem:[%s5824_s1] sm:$0xff]  ;;  %v4241_v49 = vor.u32 %v5109_v31, %v4240_v30  ;;  %1642 = vmatpush.bf16.msra.mxu3 %v3873_v44 }
  0x6b   : > { %v4256_v37 = vld [vmem:[#allocation5 + $0x600] sm:$0xf]  ;;  %v5113_v38 = vld [vmem:[#allocation5 + $0x60c] sm:$0xf0]  ;;  %v5848_v54 = vpack.c.bf16 %v391_v36, %v384_v34  ;;  %v5850_v55 = vpack.c.bf16 %v389_v43, %v382_v42  ;;  %1649 = vmatpush.bf16.msrb.mxu0 %v4113_v45  ;;  %v4931_v34 = vld [vmem:[#allocation5 + $0x64] sm:$0xf] }
  0x6c   : > { %v392_v48 = vld [vmem:[%s5824_s1 + $0x50] sm:$0xff]  ;;  %v4257_v59 = vor.u32 %v5113_v38, %v4256_v37  ;;  %v390_v62 = vld [vmem:[%s5824_s1 + $0x40] sm:$0xff]  ;;  %1663 = vmatpush.bf16.msrb.mxu1 %v4241_v49  ;;  %v395_v37 = vld [vmem:[%s5824_s1 + $0x68] sm:$0xff]  ;;  %v3685_v38 = vor.u32 %v4967_v26, %v3682_v27 }
  0x6d   : > { %v4096_v51 = vld [vmem:[#allocation5 + $0x4c0] sm:$0xf]  ;;  %v5073_v52 = vld [vmem:[#allocation5 + $0x4cc] sm:$0xf0]  ;;  %v5852_v60 = vpack.c.bf16 %v392_v48, %v385_v47  ;;  %1629 = vmatmul.bf16.vlgmr.msra.gmra.mxu2 %v5848_v54  ;;  %1601 = vmatmul.bf16.vlgmr.msra.gmra.mxu0 %v5850_v55  ;;  %v5858_v8 = vpack.c.bf16 %v390_v62, %v383_v61  ;;  %v3538_v35 = vld [vmem:[#allocation5 + $0x70] sm:$0xf0] }
  0x6e   : > { %v4224_v53 = vld [vmem:[#allocation5 + $0x5c0] sm:$0xf]  ;;  %v5105_v56 = vld [vmem:[#allocation5 + $0x5cc] sm:$0xf0]  ;;  %v4097_v0 = vor.u32 %v5073_v52, %v4096_v51  ;;  %1691 = vmatpush.bf16.msrb.mxu3 %v3605_v50  ;;  %1684 = vmatpush.bf16.msrb.mxu2 %v4257_v59  ;;  %v4963_v40 = vld [vmem:[#allocation5 + $0x164] sm:$0xf]  ;;  %v3541_v43 = vor.u32 %v4931_v34, %v3538_v35 }
  0x6f   : > { %v4225_v3 = vor.u32 %v5105_v56, %v4224_v53  ;;  %v4080_v5 = vld [vmem:[#allocation5 + $0x4a0] sm:$0xf]  ;;  %v5069_v6 = vld [vmem:[#allocation5 + $0x4ac] sm:$0xf0]  ;;  %1643 = vmatmul.bf16.vlgmr.msra.gmra.mxu3 %v5852_v60  ;;  %1615 = vmatmul.bf16.vlgmr.msra.gmra.mxu1 %v5858_v8  ;;  %v4927_v48 = vld [vmem:[#allocation5 + $0x44] sm:$0xf]  ;;  %v3669_v51 = vor.u32 %v4963_v40, %v3666_v41 }
  0x70   : > { %v4208_v7 = vld [vmem:[#allocation5 + $0x5a0] sm:$0xf]  ;;  %v5101_v9 = vld [vmem:[#allocation5 + $0x5ac] sm:$0xf0]  ;;  %1650 = vmatpush.bf16.msrb.mxu0 %v4097_v0  ;;  %v4081_v13 = vor.u32 %v5069_v6, %v4080_v5  ;;  %v3522_v49 = vld [vmem:[#allocation5 + $0x50] sm:$0xf0] }
  0x71   : > { %1664 = vmatpush.bf16.msrb.mxu1 %v4225_v3  ;;  %v4209_v16 = vor.u32 %v5101_v9, %v4208_v7  ;;  %v4064_v18 = vld [vmem:[#allocation5 + $0x480] sm:$0xf]  ;;  %v5065_v19 = vld [vmem:[#allocation5 + $0x48c] sm:$0xf0]  ;;  %v4959_v53 = vld [vmem:[#allocation5 + $0x144] sm:$0xf]  ;;  %v3525_v58 = vor.u32 %v4927_v48, %v3522_v49 }
  0x72   : > { %1705 = vmatpush.bf16.msra.mxu2 %v3733_v63  ;;  %1692 = vmatpush.bf16.msrb.mxu3 %v3589_v4  ;;  %v4192_v20 = vld [vmem:[#allocation5 + $0x580] sm:$0xf]  ;;  %v5097_v21 = vld [vmem:[#allocation5 + $0x58c] sm:$0xf0]  ;;  %v4065_v25 = vor.u32 %v5065_v19, %v4064_v18  ;;  %v3650_v56 = vld [vmem:[#allocation5 + $0x150] sm:$0xf0] }
  0x73   : > { %v4193_v28 = vor.u32 %v5097_v21, %v4192_v20  ;;  %v4048_v30 = vld [vmem:[#allocation5 + $0x460] sm:$0xf]  ;;  %v5061_v31 = vld [vmem:[#allocation5 + $0x46c] sm:$0xf0]  ;;  %v4923_v0 = vld [vmem:[#allocation5 + $0x24] sm:$0xf]  ;;  %v3653_v4 = vor.u32 %v4959_v53, %v3650_v56 }
  0x74   : > { %1651 = vmatpush.bf16.msrb.mxu0 %v4081_v13  ;;  %v4176_v32 = vld [vmem:[#allocation5 + $0x560] sm:$0xf]  ;;  %v5093_v33 = vld [vmem:[#allocation5 + $0x56c] sm:$0xf0]  ;;  %v4049_v39 = vor.u32 %v5061_v31, %v4048_v30  ;;  %v3506_v1 = vld [vmem:[#allocation5 + $0x30] sm:$0xf0] }
  0x75   : > { %1665 = vmatpush.bf16.msrb.mxu1 %v4209_v16  ;;  %v388_v36 = vld [vmem:[%s5824_s1 + $0x30] sm:$0xff]  ;;  %v4177_v42 = vor.u32 %v5093_v33, %v4176_v32  ;;  %v3509_v11 = vor.u32 %v4923_v0, %v3506_v1  ;;  %v386_v23 = vld [vmem:[%s5824_s1 + $0x20] sm:$0xff] }
  0x76   : > { %1706 = vmatpush.bf16.msra.mxu2 %v3717_v12  ;;  %1693 = vmatpush.bf16.msrb.mxu3 %v3573_v17  ;;  %v4032_v44 = vld [vmem:[#allocation5 + $0x440] sm:$0xf]  ;;  %v5057_v45 = vld [vmem:[#allocation5 + $0x44c] sm:$0xf0]  ;;  %v5864_v50 = vpack.c.bf16 %v395_v37, %v388_v36  ;;  %v4955_v2 = vld [vmem:[#allocation5 + $0x124] sm:$0xf] }
  0x77   : > { %v4160_v46 = vld [vmem:[#allocation5 + $0x540] sm:$0xf]  ;;  %v5089_v47 = vld [vmem:[#allocation5 + $0x54c] sm:$0xf0]  ;;  %v4033_v52 = vor.u32 %v5057_v45, %v4032_v44  ;;  %v3634_v3 = vld [vmem:[#allocation5 + $0x130] sm:$0xf0] }
  0x78   : > { %1652 = vmatpush.bf16.msrb.mxu0 %v4065_v25  ;;  %v4161_v57 = vor.u32 %v5089_v47, %v4160_v46  ;;  %v4016_v59 = vld [vmem:[#allocation5 + $0x420] sm:$0xf]  ;;  %v5053_v61 = vld [vmem:[#allocation5 + $0x42c] sm:$0xf0]  ;;  %v4919_v13 = vld [vmem:[#allocation5 + $0x4] sm:$0xf]  ;;  %v3637_v21 = vor.u32 %v4955_v2, %v3634_v3 }
  0x79   : > { %1666 = vmatpush.bf16.msrb.mxu1 %v4193_v28  ;;  %v4144_v62 = vld [vmem:[#allocation5 + $0x520] sm:$0xf]  ;;  %v5085_v63 = vld [vmem:[#allocation5 + $0x52c] sm:$0xf0]  ;;  %v4017_v5 = vor.u32 %v5053_v61, %v4016_v59  ;;  %v3490_v14 = vld [vmem:[#allocation5 + $0x10] sm:$0xf0] }
  0x7a   : > { %1707 = vmatpush.bf16.msra.mxu2 %v3701_v24  ;;  %1694 = vmatpush.bf16.msrb.mxu3 %v3557_v29  ;;  %v4000_v6 = vld [vmem:[#allocation5 + $0x400] sm:$0xf]  ;;  %v5049_v7 = vld [vmem:[#allocation5 + $0x40c] sm:$0xf0]  ;;  %v4145_v10 = vor.u32 %v5085_v63, %v4144_v62  ;;  %v5011_v15 = vld [vmem:[#allocation5 + $0x2e4] sm:$0xf]  ;;  %v3493_v27 = vor.u32 %v4919_v13, %v3490_v14 }
  0x7b   : > { %v4128_v9 = vld [vmem:[#allocation5 + $0x500] sm:$0xf]  ;;  %v5081_v12 = vld [vmem:[#allocation5 + $0x50c] sm:$0xf0]  ;;  %v3858_v16 = vld [vmem:[#allocation5 + $0x2f0] sm:$0xf0]  ;;  %v4001_v22 = vor.u32 %v5049_v7, %v4000_v6 }
  0x7c   : > { %1653 = vmatpush.bf16.msrb.mxu0 %v4049_v39  ;;  %v5043_v17 = vld [vmem:[#allocation5 + $0x3e4] sm:$0xf]  ;;  %v3986_v18 = vld [vmem:[#allocation5 + $0x3f0] sm:$0xf0]  ;;  %v393_v24 = vld [vmem:[%s5824_s1 + $0x58] sm:$0xff]  ;;  %v4129_v26 = vor.u32 %v5081_v12, %v4128_v9  ;;  %v3861_v31 = vor.u32 %v5011_v15, %v3858_v16 }
  0x7d   : > { %1667 = vmatpush.bf16.msrb.mxu1 %v4177_v42  ;;  %4270 = vmatmul.msk.bf16.vlgmr.msrb.gmra.mxu2 %vm1589_vm0, %v5864_v50  ;;  %v5075_v19 = vld [vmem:[#allocation5 + $0x4e4] sm:$0xf]  ;;  %v4114_v20 = vld [vmem:[#allocation5 + $0x4f0] sm:$0xf0]  ;;  %v387_v29 = vld [vmem:[%s5824_s1 + $0x28] sm:$0xff]  ;;  %v3989_v32 = vor.u32 %v5043_v17, %v3986_v18  ;;  %v5872_v37 = vpack.c.bf16 %v393_v24, %v386_v23 }
  0x7e   : > { %1708 = vmatpush.bf16.msra.mxu2 %v3685_v38  ;;  %1695 = vmatpush.bf16.msrb.mxu3 %v3541_v43  ;;  %v4951_v25 = vld [vmem:[#allocation5 + $0x104] sm:$0xf]  ;;  %v3618_v28 = vld [vmem:[#allocation5 + $0x110] sm:$0xf0]  ;;  %v4117_v36 = vor.u32 %v5075_v19, %v4114_v20 }
  0x7f   : > { %v394_v30 = vld [vmem:[%s5824_s1 + $0x60] sm:$0xff]  ;;  %v3621_v41 = vor.u32 %v4951_v25, %v3618_v28 }
  0x80   : > { %1654 = vmatpush.bf16.msrb.mxu0 %v4033_v52  ;;  %v5107_v33 = vld [vmem:[#allocation5 + $0x5e4] sm:$0xf]  ;;  %v4242_v34 = vld [vmem:[#allocation5 + $0x5f0] sm:$0xf0]  ;;  %v5874_v42 = vpack.c.bf16 %v394_v30, %v387_v29 }
  0x81   : > { %1668 = vmatpush.bf16.msrb.mxu1 %v4161_v57  ;;  %v5007_v35 = vld [vmem:[#allocation5 + $0x2c4] sm:$0xf]  ;;  %v3842_v38 = vld [vmem:[#allocation5 + $0x2d0] sm:$0xf0]  ;;  %v4245_v45 = vor.u32 %v5107_v33, %v4242_v34 }
  0x82   : > { %1709 = vmatpush.bf16.msra.mxu2 %v3669_v51  ;;  %1696 = vmatpush.bf16.msrb.mxu3 %v3525_v58  ;;  %v5039_v39 = vld [vmem:[#allocation5 + $0x3c4] sm:$0xf]  ;;  %v3970_v40 = vld [vmem:[#allocation5 + $0x3d0] sm:$0xf0]  ;;  %v3845_v46 = vor.u32 %v5007_v35, %v3842_v38 }
  0x83   : > { %v5071_v43 = vld [vmem:[#allocation5 + $0x4c4] sm:$0xf]  ;;  %v4098_v44 = vld [vmem:[#allocation5 + $0x4d0] sm:$0xf0]  ;;  %v3973_v47 = vor.u32 %v5039_v39, %v3970_v40 }
  0x84   : > { %1655 = vmatpush.bf16.msrb.mxu0 %v4017_v5  ;;  %v5103_v48 = vld [vmem:[#allocation5 + $0x5c4] sm:$0xf]  ;;  %v4226_v49 = vld [vmem:[#allocation5 + $0x5d0] sm:$0xf0]  ;;  %v4101_v52 = vor.u32 %v5071_v43, %v4098_v44 }
  0x85   : > { %1669 = vmatpush.bf16.msrb.mxu1 %v4145_v10  ;;  %v5003_v51 = vld [vmem:[#allocation5 + $0x2a4] sm:$0xf]  ;;  %v3826_v53 = vld [vmem:[#allocation5 + $0x2b0] sm:$0xf0]  ;;  %v4229_v61 = vor.u32 %v5103_v48, %v4226_v49 }
  0x86   : > { %1710 = vmatpush.bf16.msra.mxu2 %v3653_v4  ;;  %1697 = vmatpush.bf16.msrb.mxu3 %v3509_v11  ;;  %v5035_v56 = vld [vmem:[#allocation5 + $0x3a4] sm:$0xf]  ;;  %v3954_v57 = vld [vmem:[#allocation5 + $0x3b0] sm:$0xf0]  ;;  %v3829_v62 = vor.u32 %v5003_v51, %v3826_v53 }
  0x87   : > { %v5067_v58 = vld [vmem:[#allocation5 + $0x4a4] sm:$0xf]  ;;  %v4082_v59 = vld [vmem:[#allocation5 + $0x4b0] sm:$0xf0]  ;;  %v3957_v63 = vor.u32 %v5035_v56, %v3954_v57 }
  0x88   : > { %1656 = vmatpush.bf16.msrb.mxu0 %v4001_v22  ;;  %v5099_v0 = vld [vmem:[#allocation5 + $0x5a4] sm:$0xf]  ;;  %v4210_v1 = vld [vmem:[#allocation5 + $0x5b0] sm:$0xf0]  ;;  %v4085_v3 = vor.u32 %v5067_v58, %v4082_v59 }
  0x89   : > { %1670 = vmatpush.bf16.msrb.mxu1 %v4129_v26  ;;  %v4999_v2 = vld [vmem:[#allocation5 + $0x284] sm:$0xf]  ;;  %v3810_v4 = vld [vmem:[#allocation5 + $0x290] sm:$0xf0]  ;;  %v4213_v10 = vor.u32 %v5099_v0, %v4210_v1  ;;  %v3608_v0 = vld [vmem:[#allocation5 + $0xe8] sm:$0xf] }
  0x8a   : > { %1711 = vmatpush.bf16.msra.mxu2 %v3637_v21  ;;  %1698 = vmatpush.bf16.msrb.mxu3 %v3493_v27  ;;  %v5031_v5 = vld [vmem:[#allocation5 + $0x384] sm:$0xf]  ;;  %v3938_v6 = vld [vmem:[#allocation5 + $0x390] sm:$0xf0]  ;;  %v3813_v11 = vor.u32 %v4999_v2, %v3810_v4  ;;  %v4950_v1 = vld [vmem:[#allocation5 + $0xf4] sm:$0xf0] }
  0x8b   : > { %1657 = vmatmul.bf16.vlgmr.msrb.gmra.mxu0 %v5872_v37  ;;  %v5063_v7 = vld [vmem:[#allocation5 + $0x484] sm:$0xf]  ;;  %v4066_v9 = vld [vmem:[#allocation5 + $0x490] sm:$0xf0]  ;;  %v3941_v12 = vor.u32 %v5031_v5, %v3938_v6  ;;  %v3864_v5 = vld [vmem:[#allocation5 + $0x2e8] sm:$0xf] }
  0x8c   : > { %1719 = vmatpush.bf16.msra.mxu0 %v3861_v31  ;;  %1671 = vmatmul.bf16.vlgmr.msrb.gmra.mxu1 %v5874_v42  ;;  %v5095_v13 = vld [vmem:[#allocation5 + $0x584] sm:$0xf]  ;;  %v4194_v14 = vld [vmem:[#allocation5 + $0x590] sm:$0xf0]  ;;  %v4069_v16 = vor.u32 %v5063_v7, %v4066_v9  ;;  %v5014_v6 = vld [vmem:[#allocation5 + $0x2f4] sm:$0xf0] }
  0x8d   : > { %1733 = vmatpush.bf16.msra.mxu1 %v3989_v32  ;;  %1699 = vmatmul.bf16.vlgmr.msrb.gmra.mxu3 %v5850_v55  ;;  %v4995_v15 = vld [vmem:[#allocation5 + $0x264] sm:$0xf]  ;;  %v3794_v17 = vld [vmem:[#allocation5 + $0x270] sm:$0xf0]  ;;  %v4197_v22 = vor.u32 %v5095_v13, %v4194_v14  ;;  %v3609_v13 = vor.u32 %v4950_v1, %v3608_v0  ;;  %v3992_v14 = vld [vmem:[#allocation5 + $0x3e8] sm:$0xf] }
  0x8e   : > { %1747 = vmatpush.bf16.msra.mxu3 %v4117_v36  ;;  %1712 = vmatpush.bf16.msra.mxu2 %v3621_v41  ;;  %v5027_v18 = vld [vmem:[#allocation5 + $0x364] sm:$0xf]  ;;  %v3922_v19 = vld [vmem:[#allocation5 + $0x370] sm:$0xf0]  ;;  %v3797_v23 = vor.u32 %v4995_v15, %v3794_v17  ;;  %v5046_v15 = vld [vmem:[#allocation5 + $0x3f4] sm:$0xf0] }
  0x8f   : > { %v5059_v20 = vld [vmem:[#allocation5 + $0x464] sm:$0xf]  ;;  %v4050_v21 = vld [vmem:[#allocation5 + $0x470] sm:$0xf0]  ;;  %v3925_v24 = vor.u32 %v5027_v18, %v3922_v19  ;;  %v3736_v17 = vld [vmem:[#allocation5 + $0x1e8] sm:$0xf]  ;;  %v3865_v19 = vor.u32 %v5014_v6, %v3864_v5 }
  0x90   : > { %1720 = vmatpush.bf16.msra.mxu0 %v3845_v46  ;;  %v5091_v25 = vld [vmem:[#allocation5 + $0x564] sm:$0xf]  ;;  %v4178_v26 = vld [vmem:[#allocation5 + $0x570] sm:$0xf0]  ;;  %v4053_v28 = vor.u32 %v5059_v20, %v4050_v21  ;;  %v4982_v18 = vld [vmem:[#allocation5 + $0x1f4] sm:$0xf0] }
  0x91   : > { %1734 = vmatpush.bf16.msra.mxu1 %v3973_v47  ;;  %1713 = vmatmul.bf16.vlgmr.msra.gmra.mxu2 %v5858_v8  ;;  %v4991_v27 = vld [vmem:[#allocation5 + $0x244] sm:$0xf]  ;;  %v3778_v29 = vld [vmem:[#allocation5 + $0x250] sm:$0xf0]  ;;  %v4181_v34 = vor.u32 %v5091_v25, %v4178_v26  ;;  %v3592_v21 = vld [vmem:[#allocation5 + $0xc8] sm:$0xf]  ;;  %v3737_v26 = vor.u32 %v4982_v18, %v3736_v17 }
  0x92   : > { %1761 = vmatpush.bf16.msrb.mxu2 %v4245_v45  ;;  %1748 = vmatpush.bf16.msra.mxu3 %v4101_v52  ;;  %v5023_v30 = vld [vmem:[#allocation5 + $0x344] sm:$0xf]  ;;  %v3906_v31 = vld [vmem:[#allocation5 + $0x350] sm:$0xf0]  ;;  %v3781_v35 = vor.u32 %v4991_v27, %v3778_v29  ;;  %v5010_v25 = vld [vmem:[#allocation5 + $0x2d4] sm:$0xf0] }
  0x93   : > { %v5055_v32 = vld [vmem:[#allocation5 + $0x444] sm:$0xf]  ;;  %v4034_v33 = vld [vmem:[#allocation5 + $0x450] sm:$0xf0]  ;;  %v3909_v36 = vor.u32 %v5023_v30, %v3906_v31  ;;  %v3976_v27 = vld [vmem:[#allocation5 + $0x3c8] sm:$0xf] }
  0x94   : > { %1721 = vmatpush.bf16.msra.mxu0 %v3829_v62  ;;  %v5087_v38 = vld [vmem:[#allocation5 + $0x544] sm:$0xf]  ;;  %v4162_v39 = vld [vmem:[#allocation5 + $0x550] sm:$0xf0]  ;;  %v4037_v41 = vor.u32 %v5055_v32, %v4034_v33  ;;  %v3720_v30 = vld [vmem:[#allocation5 + $0x1c8] sm:$0xf] }
  0x95   : > { %1735 = vmatpush.bf16.msra.mxu1 %v3957_v63  ;;  %v4987_v40 = vld [vmem:[#allocation5 + $0x224] sm:$0xf]  ;;  %v3762_v43 = vld [vmem:[#allocation5 + $0x230] sm:$0xf0]  ;;  %v4165_v48 = vor.u32 %v5087_v38, %v4162_v39  ;;  %v4978_v31 = vld [vmem:[#allocation5 + $0x1d4] sm:$0xf0] }
  0x96   : > { %1762 = vmatpush.bf16.msrb.mxu2 %v4229_v61  ;;  %1749 = vmatpush.bf16.msra.mxu3 %v4085_v3  ;;  %v5019_v44 = vld [vmem:[#allocation5 + $0x324] sm:$0xf]  ;;  %v3890_v45 = vld [vmem:[#allocation5 + $0x330] sm:$0xf0]  ;;  %v3765_v52 = vor.u32 %v4987_v40, %v3762_v43  ;;  %v3576_v33 = vld [vmem:[#allocation5 + $0xa8] sm:$0xf]  ;;  %v3721_v39 = vor.u32 %v4978_v31, %v3720_v30 }
  0x97   : > { %v5051_v46 = vld [vmem:[#allocation5 + $0x424] sm:$0xf]  ;;  %v4018_v47 = vld [vmem:[#allocation5 + $0x430] sm:$0xf0]  ;;  %v3893_v53 = vor.u32 %v5019_v44, %v3890_v45  ;;  %v5006_v38 = vld [vmem:[#allocation5 + $0x2b4] sm:$0xf0] }
  0x98   : > { %1722 = vmatpush.bf16.msra.mxu0 %v3813_v11  ;;  %v5083_v49 = vld [vmem:[#allocation5 + $0x524] sm:$0xf]  ;;  %v4146_v51 = vld [vmem:[#allocation5 + $0x530] sm:$0xf0]  ;;  %v4021_v59 = vor.u32 %v5051_v46, %v4018_v47  ;;  %v3960_v40 = vld [vmem:[#allocation5 + $0x3a8] sm:$0xf] }
  0x99   : > { %1736 = vmatpush.bf16.msra.mxu1 %v3941_v12  ;;  %v4983_v56 = vld [vmem:[#allocation5 + $0x204] sm:$0xf]  ;;  %v3746_v57 = vld [vmem:[#allocation5 + $0x210] sm:$0xf0]  ;;  %v4149_v3 = vor.u32 %v5083_v49, %v4146_v51  ;;  %v3704_v44 = vld [vmem:[#allocation5 + $0x1a8] sm:$0xf] }
  0x9a   : > { %1763 = vmatpush.bf16.msrb.mxu2 %v4213_v10  ;;  %1750 = vmatpush.bf16.msra.mxu3 %v4069_v16  ;;  %v5015_v58 = vld [vmem:[#allocation5 + $0x304] sm:$0xf]  ;;  %v3874_v61 = vld [vmem:[#allocation5 + $0x310] sm:$0xf0]  ;;  %v3749_v7 = vor.u32 %v4983_v56, %v3746_v57  ;;  %v4974_v45 = vld [vmem:[#allocation5 + $0x1b4] sm:$0xf0] }
  0x9b   : > { %v5047_v62 = vld [vmem:[#allocation5 + $0x404] sm:$0xf]  ;;  %v4002_v63 = vld [vmem:[#allocation5 + $0x410] sm:$0xf0]  ;;  %v3877_v9 = vor.u32 %v5015_v58, %v3874_v61  ;;  %v3560_v47 = vld [vmem:[#allocation5 + $0x88] sm:$0xf] }
  0x9c   : > { %1723 = vmatpush.bf16.msra.mxu0 %v3797_v23  ;;  %v5111_v2 = vld [vmem:[#allocation5 + $0x604] sm:$0xf]  ;;  %v4258_v4 = vld [vmem:[#allocation5 + $0x610] sm:$0xf0]  ;;  %v4005_v12 = vor.u32 %v5047_v62, %v4002_v63  ;;  %v3993_v23 = vor.u32 %v5046_v15, %v3992_v14  ;;  %v3816_v51 = vld [vmem:[#allocation5 + $0x288] sm:$0xf] }
  0x9d   : > { %1737 = vmatpush.bf16.msra.mxu1 %v3925_v24  ;;  %v5079_v10 = vld [vmem:[#allocation5 + $0x504] sm:$0xf]  ;;  %v4130_v11 = vld [vmem:[#allocation5 + $0x510] sm:$0xf0]  ;;  %v4261_v16 = vor.u32 %v5111_v2, %v4258_v4  ;;  %v3848_v24 = vld [vmem:[#allocation5 + $0x2c8] sm:$0xf] }
  0x9e   : > { %1764 = vmatpush.bf16.msrb.mxu2 %v4197_v22  ;;  %1751 = vmatpush.bf16.msra.mxu3 %v4053_v28  ;;  %v4133_v20 = vor.u32 %v5079_v10, %v4130_v11  ;;  %v4946_v22 = vld [vmem:[#allocation5 + $0xd4] sm:$0xf0]  ;;  %v3849_v32 = vor.u32 %v5010_v25, %v3848_v24  ;;  %v3944_v56 = vld [vmem:[#allocation5 + $0x388] sm:$0xf] }
  0x9f   : > { %v5042_v28 = vld [vmem:[#allocation5 + $0x3d4] sm:$0xf0]  ;;  %v3593_v29 = vor.u32 %v4946_v22, %v3592_v21  ;;  %v3544_v63 = vld [vmem:[#allocation5 + $0x68] sm:$0xf] }
  0xa0   : > { %1724 = vmatpush.bf16.msra.mxu0 %v3781_v35  ;;  %v3977_v35 = vor.u32 %v5042_v28, %v3976_v27  ;;  %v5034_v57 = vld [vmem:[#allocation5 + $0x394] sm:$0xf0]  ;;  %v3800_v2 = vld [vmem:[#allocation5 + $0x268] sm:$0xf] }
  0xa1   : > { %1738 = vmatpush.bf16.msra.mxu1 %v3909_v36  ;;  %v3832_v36 = vld [vmem:[#allocation5 + $0x2a8] sm:$0xf]  ;;  %v4970_v61 = vld [vmem:[#allocation5 + $0x194] sm:$0xf0]  ;;  %v3945_v1 = vor.u32 %v5034_v57, %v3944_v56  ;;  %v4948_v56 = vld [vmem:[#allocation5 + $0xec] sm:$0xf] }
  0xa2   : > { %1765 = vmatpush.bf16.msrb.mxu2 %v4181_v34  ;;  %1752 = vmatpush.bf16.msra.mxu3 %v4037_v41  ;;  %v4942_v34 = vld [vmem:[#allocation5 + $0xb4] sm:$0xf0]  ;;  %v3833_v46 = vor.u32 %v5006_v38, %v3832_v36  ;;  %v3928_v5 = vld [vmem:[#allocation5 + $0x368] sm:$0xf]  ;;  %v3610_v57 = vld [vmem:[#allocation5 + $0xf8] sm:$0xf0] }
  0xa3   : > { %v5038_v41 = vld [vmem:[#allocation5 + $0x3b4] sm:$0xf0]  ;;  %v3577_v43 = vor.u32 %v4942_v34, %v3576_v33  ;;  %v3784_v15 = vld [vmem:[#allocation5 + $0x248] sm:$0xf] }
  0xa4   : > { %1725 = vmatpush.bf16.msra.mxu0 %v3765_v52  ;;  %v3961_v49 = vor.u32 %v5038_v41, %v3960_v40  ;;  %v5002_v52 = vld [vmem:[#allocation5 + $0x294] sm:$0xf0]  ;;  %v3912_v18 = vld [vmem:[#allocation5 + $0x348] sm:$0xf] }
  0xa5   : > { %1739 = vmatpush.bf16.msra.mxu1 %v3893_v53  ;;  %v3705_v53 = vor.u32 %v4974_v45, %v3704_v44  ;;  %v3817_v62 = vor.u32 %v5002_v52, %v3816_v51  ;;  %v4934_v0 = vld [vmem:[#allocation5 + $0x74] sm:$0xf0]  ;;  %v3656_v21 = vld [vmem:[#allocation5 + $0x148] sm:$0xf] }
  0xa6   : > { %1766 = vmatpush.bf16.msrb.mxu2 %v4165_v48  ;;  %1753 = vmatpush.bf16.msra.mxu3 %v4021_v59  ;;  %v4938_v48 = vld [vmem:[#allocation5 + $0x94] sm:$0xf0]  ;;  %v3688_v59 = vld [vmem:[#allocation5 + $0x188] sm:$0xf] }
  0xa7   : > { %v3561_v58 = vor.u32 %v4938_v48, %v3560_v47  ;;  %v3689_v4 = vor.u32 %v4970_v61, %v3688_v59  ;;  %v5030_v6 = vld [vmem:[#allocation5 + $0x374] sm:$0xf0]  ;;  %v3512_v24 = vld [vmem:[#allocation5 + $0x28] sm:$0xf] }
  0xa8   : > { %1726 = vmatpush.bf16.msra.mxu0 %v3749_v7  ;;  %v3545_v7 = vor.u32 %v4934_v0, %v3544_v63  ;;  %v4966_v10 = vld [vmem:[#allocation5 + $0x174] sm:$0xf0]  ;;  %v3929_v14 = vor.u32 %v5030_v6, %v3928_v5  ;;  %v3768_v27 = vld [vmem:[#allocation5 + $0x228] sm:$0xf]  ;;  %v3613_v6 = vor.u32 %v4948_v56, %v3610_v57 }
  0xa9   : > { %1740 = vmatpush.bf16.msra.mxu1 %v3877_v9  ;;  %v3672_v9 = vld [vmem:[#allocation5 + $0x168] sm:$0xf]  ;;  %v4962_v22 = vld [vmem:[#allocation5 + $0x154] sm:$0xf0] }
  0xaa   : > { %1767 = vmatpush.bf16.msrb.mxu2 %v4149_v3  ;;  %1754 = vmatpush.bf16.msra.mxu3 %v4005_v12  ;;  %v4998_v3 = vld [vmem:[#allocation5 + $0x274] sm:$0xf0]  ;;  %v3528_v12 = vld [vmem:[#allocation5 + $0x48] sm:$0xf]  ;;  %v3673_v17 = vor.u32 %v4966_v10, %v3672_v9  ;;  %v4944_v9 = vld [vmem:[#allocation5 + $0xcc] sm:$0xf] }
  0xab   : > { %1727 = vmatmul.bf16.vlgmr.msra.gmra.mxu0 %v5848_v54  ;;  %v3801_v11 = vor.u32 %v4998_v3, %v3800_v2  ;;  %v4926_v25 = vld [vmem:[#allocation5 + $0x34] sm:$0xf0]  ;;  %v3896_v30 = vld [vmem:[#allocation5 + $0x328] sm:$0xf]  ;;  %v4980_v3 = vld [vmem:[#allocation5 + $0x1ec] sm:$0xf] }
  0xac   : > { %1817 = vmatpush.bf16.msrb.mxu0 %v3865_v19  ;;  %1741 = vmatmul.bf16.vlgmr.msra.gmra.mxu1 %v5852_v60  ;;  %v5026_v19 = vld [vmem:[#allocation5 + $0x354] sm:$0xf0]  ;;  %v3640_v33 = vld [vmem:[#allocation5 + $0x128] sm:$0xf]  ;;  %v3594_v10 = vld [vmem:[#allocation5 + $0xd8] sm:$0xf0] }
  0xad   : > { %1789 = vmatpush.bf16.msrb.mxu1 %v3609_v13  ;;  %1755 = vmatmul.bf16.vlgmr.msra.gmra.mxu3 %v5872_v37  ;;  %v4930_v13 = vld [vmem:[#allocation5 + $0x54] sm:$0xf0]  ;;  %v3752_v44 = vld [vmem:[#allocation5 + $0x208] sm:$0xf] }
  0xae   : > { %1782 = vmatpush.bf16.msrb.mxu3 %v4261_v16  ;;  %1768 = vmatpush.bf16.msrb.mxu2 %v4133_v20  ;;  %v4994_v16 = vld [vmem:[#allocation5 + $0x254] sm:$0xf0]  ;;  %v3529_v20 = vor.u32 %v4930_v13, %v3528_v12  ;;  %v4248_v61 = vld [vmem:[#allocation5 + $0x5e8] sm:$0xf] }
  0xaf   : > { %v4990_v28 = vld [vmem:[#allocation5 + $0x234] sm:$0xf0]  ;;  %v4104_v63 = vld [vmem:[#allocation5 + $0x4c8] sm:$0xf] }
  0xb0   : > { %1818 = vmatpush.bf16.msrb.mxu0 %v3849_v32  ;;  %v5022_v31 = vld [vmem:[#allocation5 + $0x334] sm:$0xf0]  ;;  %v3513_v32 = vor.u32 %v4926_v25, %v3512_v24  ;;  %v3769_v36 = vor.u32 %v4990_v28, %v3768_v27  ;;  %v4232_v13 = vld [vmem:[#allocation5 + $0x5c8] sm:$0xf] }
  0xb1   : > { %1790 = vmatpush.bf16.msrb.mxu1 %v3593_v29  ;;  %1769 = vmatmul.bf16.vlgmr.msrb.gmra.mxu2 %v5874_v42  ;;  %v3657_v29 = vor.u32 %v4962_v22, %v3656_v21  ;;  %v4958_v34 = vld [vmem:[#allocation5 + $0x134] sm:$0xf0]  ;;  %v3897_v41 = vor.u32 %v5022_v31, %v3896_v30  ;;  %v4940_v21 = vld [vmem:[#allocation5 + $0xac] sm:$0xf]  ;;  %v3578_v22 = vld [vmem:[#allocation5 + $0xb8] sm:$0xf0] }
  0xb2   : > { %1831 = vmatpush.bf16.msra.mxu2 %v3993_v23  ;;  %1803 = vmatpush.bf16.msra.mxu3 %v3737_v26  ;;  %v3785_v23 = vor.u32 %v4994_v16, %v3784_v15  ;;  %v3913_v26 = vor.u32 %v5026_v19, %v3912_v18  ;;  %v4922_v38 = vld [vmem:[#allocation5 + $0x14] sm:$0xf0]  ;;  %v3641_v47 = vor.u32 %v4958_v34, %v3640_v33  ;;  %v4088_v15 = vld [vmem:[#allocation5 + $0x4a8] sm:$0xf]  ;;  %v3722_v18 = vld [vmem:[#allocation5 + $0x1d8] sm:$0xf0] }
  0xb3   : > { %v5078_v40 = vld [vmem:[#allocation5 + $0x4f4] sm:$0xf0]  ;;  %v3597_v19 = vor.u32 %v4944_v9, %v3594_v10  ;;  %v4216_v25 = vld [vmem:[#allocation5 + $0x5a8] sm:$0xf]  ;;  %v3706_v30 = vld [vmem:[#allocation5 + $0x1b8] sm:$0xf0]  ;;  %v3581_v31 = vor.u32 %v4940_v21, %v3578_v22 }
  0xb4   : > { %1819 = vmatpush.bf16.msrb.mxu0 %v3833_v46  ;;  %v4986_v45 = vld [vmem:[#allocation5 + $0x214] sm:$0xf0]  ;;  %v3880_v46 = vld [vmem:[#allocation5 + $0x308] sm:$0xf]  ;;  %v4936_v33 = vld [vmem:[#allocation5 + $0x8c] sm:$0xf] }
  0xb5   : > { %1791 = vmatpush.bf16.msrb.mxu1 %v3577_v43  ;;  %v3624_v43 = vld [vmem:[#allocation5 + $0x108] sm:$0xf]  ;;  %v5018_v48 = vld [vmem:[#allocation5 + $0x314] sm:$0xf0]  ;;  %v3753_v59 = vor.u32 %v4986_v45, %v3752_v44  ;;  %v3562_v34 = vld [vmem:[#allocation5 + $0x98] sm:$0xf0] }
  0xb6   : > { %1832 = vmatpush.bf16.msra.mxu2 %v3977_v35  ;;  %1804 = vmatpush.bf16.msra.mxu3 %v3721_v39  ;;  %v3496_v35 = vld [vmem:[#allocation5 + $0x8] sm:$0xf]  ;;  %v5114_v51 = vld [vmem:[#allocation5 + $0x614] sm:$0xf0]  ;;  %v3881_v0 = vor.u32 %v5018_v48, %v3880_v46  ;;  %v3690_v44 = vld [vmem:[#allocation5 + $0x198] sm:$0xf0]  ;;  %v3565_v45 = vor.u32 %v4936_v33, %v3562_v34 }
  0xb7   : > { %v4120_v39 = vld [vmem:[#allocation5 + $0x4e8] sm:$0xf]  ;;  %v3497_v52 = vor.u32 %v4922_v38, %v3496_v35  ;;  %v5070_v16 = vld [vmem:[#allocation5 + $0x4b4] sm:$0xf0]  ;;  %v3546_v48 = vld [vmem:[#allocation5 + $0x78] sm:$0xf0] }
  0xb8   : > { %1820 = vmatpush.bf16.msrb.mxu0 %v3817_v62  ;;  %v5110_v62 = vld [vmem:[#allocation5 + $0x5f4] sm:$0xf0]  ;;  %v4072_v27 = vld [vmem:[#allocation5 + $0x488] sm:$0xf]  ;;  %v3658_v9 = vld [vmem:[#allocation5 + $0x158] sm:$0xf0] }
  0xb9   : > { %1792 = vmatpush.bf16.msrb.mxu1 %v3561_v58  ;;  %v4121_v58 = vor.u32 %v5078_v40, %v4120_v39  ;;  %v5066_v28 = vld [vmem:[#allocation5 + $0x494] sm:$0xf0]  ;;  %v4200_v38 = vld [vmem:[#allocation5 + $0x588] sm:$0xf]  ;;  %v3642_v21 = vld [vmem:[#allocation5 + $0x138] sm:$0xf0] }
  0xba   : > { %1833 = vmatpush.bf16.msra.mxu2 %v3961_v49  ;;  %1805 = vmatpush.bf16.msra.mxu3 %v3705_v53  ;;  %v4264_v49 = vld [vmem:[#allocation5 + $0x608] sm:$0xf]  ;;  %v4954_v53 = vld [vmem:[#allocation5 + $0x114] sm:$0xf0]  ;;  %v4073_v35 = vor.u32 %v5066_v28, %v4072_v27  ;;  %v4920_v27 = vld [vmem:[#allocation5 + $0xc] sm:$0xf] }
  0xbb   : > { %v4265_v2 = vor.u32 %v5114_v51, %v4264_v49  ;;  %v3625_v5 = vor.u32 %v4954_v53, %v3624_v43  ;;  %v5098_v39 = vld [vmem:[#allocation5 + $0x594] sm:$0xf0]  ;;  %v4056_v40 = vld [vmem:[#allocation5 + $0x468] sm:$0xf]  ;;  %v4968_v43 = vld [vmem:[#allocation5 + $0x18c] sm:$0xf] }
  0xbc   : > { %1821 = vmatpush.bf16.msrb.mxu0 %v3801_v11  ;;  %v4201_v46 = vor.u32 %v5098_v39, %v4200_v38  ;;  %v3693_v51 = vor.u32 %v4968_v43, %v3690_v44  ;;  %v5094_v53 = vld [vmem:[#allocation5 + $0x574] sm:$0xf0]  ;;  %v4040_v56 = vld [vmem:[#allocation5 + $0x448] sm:$0xf]  ;;  %v3498_v28 = vld [vmem:[#allocation5 + $0x18] sm:$0xf0] }
  0xbd   : > { %1793 = vmatpush.bf16.msrb.mxu1 %v3545_v7  ;;  %4271 = vmatmul.msk.bf16.vlgmr.msrb.gmra.mxu3 %vm1589_vm0, %v5864_v50  ;;  %v4249_v7 = vor.u32 %v5110_v62, %v4248_v61  ;;  %v5058_v57 = vld [vmem:[#allocation5 + $0x454] sm:$0xf0]  ;;  %v3994_v33 = vld [vmem:[#allocation5 + $0x3f8] sm:$0xf0]  ;;  %v5008_v38 = vld [vmem:[#allocation5 + $0x2cc] sm:$0xf]  ;;  %v3501_v39 = vor.u32 %v4920_v27, %v3498_v28 }
  0xbe   : > { %1834 = vmatpush.bf16.msra.mxu2 %v3945_v1  ;;  %1806 = vmatpush.bf16.msra.mxu3 %v3689_v4  ;;  %v5074_v1 = vld [vmem:[#allocation5 + $0x4d4] sm:$0xf0]  ;;  %v3738_v4 = vld [vmem:[#allocation5 + $0x1f8] sm:$0xf0] }
  0xbf   : > { %v4105_v11 = vor.u32 %v5074_v1, %v4104_v63  ;;  %v3741_v12 = vor.u32 %v4980_v3, %v3738_v4  ;;  %v4928_v63 = vld [vmem:[#allocation5 + $0x4c] sm:$0xf]  ;;  %v4041_v1 = vor.u32 %v5058_v57, %v4040_v56  ;;  %v4168_v3 = vld [vmem:[#allocation5 + $0x548] sm:$0xf]  ;;  %v5090_v4 = vld [vmem:[#allocation5 + $0x554] sm:$0xf0] }
  0xc0   : > { %1822 = vmatpush.bf16.msrb.mxu0 %v3785_v23  ;;  %v4089_v23 = vor.u32 %v5070_v16, %v4088_v15  ;;  %v4152_v16 = vld [vmem:[#allocation5 + $0x528] sm:$0xf]  ;;  %v3626_v43 = vld [vmem:[#allocation5 + $0x118] sm:$0xf0]  ;;  %v5072_v56 = vld [vmem:[#allocation5 + $0x4cc] sm:$0xf] }
  0xc1   : > { %1794 = vmatpush.bf16.msrb.mxu1 %v3529_v20  ;;  %v4106_v57 = vld [vmem:[#allocation5 + $0x4d8] sm:$0xf0] }
  0xc2   : > { %1835 = vmatpush.bf16.msra.mxu2 %v3929_v14  ;;  %1807 = vmatpush.bf16.msra.mxu3 %v3673_v17  ;;  %v5106_v14 = vld [vmem:[#allocation5 + $0x5d4] sm:$0xf0]  ;;  %v4976_v17 = vld [vmem:[#allocation5 + $0x1cc] sm:$0xf]  ;;  %v3930_v28 = vld [vmem:[#allocation5 + $0x378] sm:$0xf0] }
  0xc3   : > { %v4233_v20 = vor.u32 %v5106_v14, %v4232_v13  ;;  %v3725_v24 = vor.u32 %v4976_v17, %v3722_v18  ;;  %v3514_v13 = vld [vmem:[#allocation5 + $0x38] sm:$0xf0]  ;;  %v5086_v17 = vld [vmem:[#allocation5 + $0x534] sm:$0xf0]  ;;  %v4008_v18 = vld [vmem:[#allocation5 + $0x408] sm:$0xf] }
  0xc4   : > { %1823 = vmatpush.bf16.msrb.mxu0 %v3769_v36 }
  0xc5   : > { %1795 = vmatpush.bf16.msrb.mxu1 %v3513_v32 }
  0xc6   : > { %1836 = vmatpush.bf16.msra.mxu2 %v3913_v26  ;;  %1808 = vmatpush.bf16.msra.mxu3 %v3657_v29  ;;  %v5102_v26 = vld [vmem:[#allocation5 + $0x5b4] sm:$0xf0]  ;;  %v4972_v29 = vld [vmem:[#allocation5 + $0x1ac] sm:$0xf] }
  0xc7   : > { %v4217_v32 = vor.u32 %v5102_v26, %v4216_v25  ;;  %v3709_v36 = vor.u32 %v4972_v29, %v3706_v30  ;;  %v4153_v25 = vor.u32 %v5086_v17, %v4152_v16  ;;  %v4136_v26 = vld [vmem:[#allocation5 + $0x508] sm:$0xf]  ;;  %v3946_v17 = vld [vmem:[#allocation5 + $0x398] sm:$0xf0] }
  0xc8   : > { %1824 = vmatpush.bf16.msrb.mxu0 %v3753_v59  ;;  %v3674_v59 = vld [vmem:[#allocation5 + $0x178] sm:$0xf0] }
  0xc9   : > { %1796 = vmatpush.bf16.msrb.mxu1 %v3497_v52  ;;  %v4184_v52 = vld [vmem:[#allocation5 + $0x568] sm:$0xf] }
  0xca   : > { %1837 = vmatpush.bf16.msra.mxu2 %v3897_v41  ;;  %1809 = vmatpush.bf16.msra.mxu3 %v3641_v47  ;;  %v5062_v41 = vld [vmem:[#allocation5 + $0x474] sm:$0xf0]  ;;  %v4932_v47 = vld [vmem:[#allocation5 + $0x6c] sm:$0xf]  ;;  %v4185_v62 = vor.u32 %v5094_v53, %v4184_v52  ;;  %v3978_v53 = vld [vmem:[#allocation5 + $0x3d8] sm:$0xf0] }
  0xcb   : > { %1825 = vmatmul.bf16.vlgmr.msrb.gmra.mxu0 %v5848_v54  ;;  %v4057_v49 = vor.u32 %v5062_v41, %v4056_v40  ;;  %v3549_v61 = vor.u32 %v4932_v47, %v3546_v48  ;;  %v3850_v40 = vld [vmem:[#allocation5 + $0x2d8] sm:$0xf0]  ;;  %v4952_v41 = vld [vmem:[#allocation5 + $0x10c] sm:$0xf] }
  0xcc   : > { %1880 = vmatpush.bf16.msra.mxu0 %v4265_v2  ;;  %1797 = vmatmul.bf16.vlgmr.msrb.gmra.mxu1 %v5850_v55  ;;  %v3629_v52 = vor.u32 %v4952_v41, %v3626_v43  ;;  %v5056_v41 = vld [vmem:[#allocation5 + $0x44c] sm:$0xf]  ;;  %v4042_v43 = vld [vmem:[#allocation5 + $0x458] sm:$0xf0] }
  0xcd   : > { %1845 = vmatpush.bf16.msra.mxu1 %v4121_v58  ;;  %v4964_v58 = vld [vmem:[#allocation5 + $0x16c] sm:$0xf] }
  0xce   : > { %1838 = vmatpush.bf16.msra.mxu2 %v3881_v0  ;;  %1810 = vmatpush.bf16.msra.mxu3 %v3625_v5  ;;  %v3530_v0 = vld [vmem:[#allocation5 + $0x58] sm:$0xf0]  ;;  %v3677_v2 = vor.u32 %v4964_v58, %v3674_v59  ;;  %v4024_v5 = vld [vmem:[#allocation5 + $0x428] sm:$0xf]  ;;  %v5004_v59 = vld [vmem:[#allocation5 + $0x2ac] sm:$0xf] }
  0xcf   : > { %v3533_v10 = vor.u32 %v4928_v63, %v3530_v0  ;;  %v4234_v63 = vld [vmem:[#allocation5 + $0x5d8] sm:$0xf0] }
  0xd0   : > { %1901 = vmatpush.bf16.msrb.mxu0 %v3741_v12  ;;  %v4924_v12 = vld [vmem:[#allocation5 + $0x2c] sm:$0xf] }
  0xd1   : > { %1846 = vmatpush.bf16.msra.mxu1 %v4105_v11  ;;  %1811 = vmatmul.bf16.vlgmr.msra.gmra.mxu3 %v5858_v8  ;;  %v4169_v11 = vor.u32 %v5090_v4, %v4168_v3  ;;  %v3517_v22 = vor.u32 %v4924_v12, %v3514_v13  ;;  %v3962_v4 = vld [vmem:[#allocation5 + $0x3b8] sm:$0xf0] }
  0xd2   : > { %1887 = vmatpush.bf16.msrb.mxu2 %v3613_v6  ;;  %1859 = vmatpush.bf16.msrb.mxu3 %v4249_v7  ;;  %v5054_v6 = vld [vmem:[#allocation5 + $0x434] sm:$0xf0]  ;;  %v4960_v7 = vld [vmem:[#allocation5 + $0x14c] sm:$0xf]  ;;  %v4218_v12 = vld [vmem:[#allocation5 + $0x5b8] sm:$0xf0] }
  0xd3   : > { %1839 = vmatmul.bf16.vlgmr.msra.gmra.mxu2 %v5852_v60  ;;  %v4025_v14 = vor.u32 %v5054_v6, %v4024_v5  ;;  %v3661_v15 = vor.u32 %v4960_v7, %v3658_v9  ;;  %v5068_v5 = vld [vmem:[#allocation5 + $0x4ac] sm:$0xf]  ;;  %v4090_v6 = vld [vmem:[#allocation5 + $0x4b8] sm:$0xf0] }
  0xd4   : > { %1902 = vmatpush.bf16.msrb.mxu0 %v3725_v24  ;;  %v3866_v24 = vld [vmem:[#allocation5 + $0x2f8] sm:$0xf0]  ;;  %v5000_v9 = vld [vmem:[#allocation5 + $0x28c] sm:$0xf] }
  0xd5   : > { %1847 = vmatpush.bf16.msra.mxu1 %v4089_v23  ;;  %v5012_v23 = vld [vmem:[#allocation5 + $0x2ec] sm:$0xf] }
  0xd6   : > { %1888 = vmatpush.bf16.msrb.mxu2 %v3597_v19  ;;  %1860 = vmatpush.bf16.msrb.mxu3 %v4233_v20  ;;  %v5050_v19 = vld [vmem:[#allocation5 + $0x414] sm:$0xf0]  ;;  %v4956_v20 = vld [vmem:[#allocation5 + $0x12c] sm:$0xf]  ;;  %v3869_v34 = vor.u32 %v5012_v23, %v3866_v24 }
  0xd7   : > { %v4009_v29 = vor.u32 %v5050_v19, %v4008_v18  ;;  %v3645_v30 = vor.u32 %v4956_v20, %v3642_v21  ;;  %v5064_v18 = vld [vmem:[#allocation5 + $0x48c] sm:$0xf]  ;;  %v4074_v19 = vld [vmem:[#allocation5 + $0x498] sm:$0xf0] }
  0xd8   : > { %1903 = vmatpush.bf16.msrb.mxu0 %v3709_v36  ;;  %v4122_v36 = vld [vmem:[#allocation5 + $0x4f8] sm:$0xf0]  ;;  %v4996_v21 = vld [vmem:[#allocation5 + $0x26c] sm:$0xf] }
  0xd9   : > { %1848 = vmatpush.bf16.msra.mxu1 %v4073_v35  ;;  %v5076_v35 = vld [vmem:[#allocation5 + $0x4ec] sm:$0xf] }
  0xda   : > { %1889 = vmatpush.bf16.msrb.mxu2 %v3581_v31  ;;  %1861 = vmatpush.bf16.msrb.mxu3 %v4217_v32  ;;  %v5082_v31 = vld [vmem:[#allocation5 + $0x514] sm:$0xf0]  ;;  %v5044_v32 = vld [vmem:[#allocation5 + $0x3ec] sm:$0xf]  ;;  %v4125_v48 = vor.u32 %v5076_v35, %v4122_v36 }
  0xdb   : > { %4272 = vmatmul.msk.bf16.vlgmr.msra.gmra.mxu0 %vm1589_vm0, %v5864_v50  ;;  %v4137_v44 = vor.u32 %v5082_v31, %v4136_v26  ;;  %v3997_v47 = vor.u32 %v5044_v32, %v3994_v33  ;;  %v5096_v23 = vld [vmem:[#allocation5 + $0x58c] sm:$0xf] }
  0xdc   : > { %1904 = vmatpush.bf16.msrb.mxu0 %v3693_v51  ;;  %v3853_v51 = vor.u32 %v5008_v38, %v3850_v40  ;;  %v5028_v26 = vld [vmem:[#allocation5 + $0x36c] sm:$0xf]  ;;  %v3914_v40 = vld [vmem:[#allocation5 + $0x358] sm:$0xf0] }
  0xdd   : > { %1849 = vmatpush.bf16.msra.mxu1 %v4057_v49  ;;  %v5040_v49 = vld [vmem:[#allocation5 + $0x3cc] sm:$0xf]  ;;  %v3933_v35 = vor.u32 %v5028_v26, %v3930_v28  ;;  %v5141_v28 = vld [vmem:[#allocation8 + $0xcc] sm:$0xf0] }
  0xde   : > { %1890 = vmatpush.bf16.msrb.mxu2 %v3565_v45  ;;  %1862 = vmatpush.bf16.msrb.mxu3 %v4201_v46  ;;  %v5108_v45 = vld [vmem:[#allocation5 + $0x5ec] sm:$0xf]  ;;  %v4250_v46 = vld [vmem:[#allocation5 + $0x5f8] sm:$0xf0]  ;;  %v3981_v0 = vor.u32 %v5040_v49, %v3978_v53 }
  0xdf   : > { %v4253_v58 = vor.u32 %v5108_v45, %v4250_v46  ;;  %v4992_v32 = vld [vmem:[#allocation5 + $0x24c] sm:$0xf]  ;;  %v3770_v46 = vld [vmem:[#allocation5 + $0x238] sm:$0xf0] }
  0xe0   : > { %1905 = vmatpush.bf16.msrb.mxu0 %v3677_v2  ;;  %v5036_v2 = vld [vmem:[#allocation5 + $0x3ac] sm:$0xf] }
  0xe1   : > { %1850 = vmatpush.bf16.msra.mxu1 %v4041_v1  ;;  %v4109_v1 = vor.u32 %v5072_v56, %v4106_v57  ;;  %v3965_v13 = vor.u32 %v5036_v2, %v3962_v4  ;;  %v5092_v33 = vld [vmem:[#allocation5 + $0x56c] sm:$0xf]  ;;  %v3898_v57 = vld [vmem:[#allocation5 + $0x338] sm:$0xf0] }
  0xe2   : > { %1891 = vmatpush.bf16.msrb.mxu2 %v3549_v61  ;;  %1863 = vmatpush.bf16.msrb.mxu3 %v4185_v62  ;;  %v3834_v61 = vld [vmem:[#allocation5 + $0x2b8] sm:$0xf0]  ;;  %v5104_v62 = vld [vmem:[#allocation5 + $0x5cc] sm:$0xf] }
  0xe3   : > { %v3837_v3 = vor.u32 %v5004_v59, %v3834_v61  ;;  %v4237_v7 = vor.u32 %v5104_v62, %v4234_v63  ;;  %v5024_v38 = vld [vmem:[#allocation5 + $0x34c] sm:$0xf]  ;;  %v4026_v59 = vld [vmem:[#allocation5 + $0x438] sm:$0xf0] }
  0xe4   : > { %1906 = vmatpush.bf16.msrb.mxu0 %v3661_v15  ;;  %v5032_v15 = vld [vmem:[#allocation5 + $0x38c] sm:$0xf]  ;;  %v3917_v49 = vor.u32 %v5024_v38, %v3914_v40  ;;  %v4154_v2 = vld [vmem:[#allocation5 + $0x538] sm:$0xf0]  ;;  %v4356_v38 = vld [vmem:[#allocation8 + $0xa0] sm:$0xf] }
  0xe5   : > { %1851 = vmatpush.bf16.msra.mxu1 %v4025_v14  ;;  %v4093_v14 = vor.u32 %v5068_v5, %v4090_v6  ;;  %v3949_v24 = vor.u32 %v5032_v15, %v3946_v17  ;;  %v4988_v45 = vld [vmem:[#allocation5 + $0x22c] sm:$0xf]  ;;  %v4266_v4 = vld [vmem:[#allocation5 + $0x618] sm:$0xf0]  ;;  %v5145_v17 = vld [vmem:[#allocation8 + $0xec] sm:$0xf0] }
  0xe6   : > { %1892 = vmatpush.bf16.msrb.mxu2 %v3533_v10  ;;  %1864 = vmatpush.bf16.msrb.mxu3 %v4169_v11  ;;  %v3818_v10 = vld [vmem:[#allocation5 + $0x298] sm:$0xf0]  ;;  %v5100_v11 = vld [vmem:[#allocation5 + $0x5ac] sm:$0xf]  ;;  %v3773_v56 = vor.u32 %v4988_v45, %v3770_v46 }
  0xe7   : > { %v3821_v16 = vor.u32 %v5000_v9, %v3818_v10  ;;  %v4221_v20 = vor.u32 %v5100_v11, %v4218_v12  ;;  %v4984_v63 = vld [vmem:[#allocation5 + $0x20c] sm:$0xf]  ;;  %v5898_v9 = vld [vmem:[#allocation7] sm:$0xf]  ;;  %v3882_v12 = vld [vmem:[#allocation5 + $0x318] sm:$0xf0] }
  0xe8   : > { %1907 = vmatpush.bf16.msrb.mxu0 %v3645_v30  ;;  %v4058_v30 = vld [vmem:[#allocation5 + $0x478] sm:$0xf0] }
  0xe9   : > { %1852 = vmatpush.bf16.msra.mxu1 %v4009_v29  ;;  %v5060_v29 = vld [vmem:[#allocation5 + $0x46c] sm:$0xf] }
  0xea   : > { %1893 = vmatpush.bf16.msrb.mxu2 %v3517_v22  ;;  %1865 = vmatpush.bf16.msrb.mxu3 %v4153_v25  ;;  %v3802_v22 = vld [vmem:[#allocation5 + $0x278] sm:$0xf0]  ;;  %v4077_v25 = vor.u32 %v5064_v18, %v4074_v19  ;;  %v4061_v36 = vor.u32 %v5060_v29, %v4058_v30  ;;  %v1602_v53 = vpop.f32.mrf.mxu0  ;;  %v5080_v18 = vld [vmem:[#allocation5 + $0x50c] sm:$0xf] }
  0xeb   : > { %v3805_v27 = vor.u32 %v4996_v21, %v3802_v22  ;;  %v4516_v21 = vld [vmem:[#allocation8 + $0x1e0] sm:$0xf]  ;;  %v5177_v22 = vld [vmem:[#allocation8 + $0x1ec] sm:$0xf0] }
  0xec   : > { %1853 = vmatmul.bf16.vlgmr.msra.gmra.mxu1 %v5872_v37  ;;  %1908 = vmatpush.bf16.msrb.mxu0 %v3629_v52  ;;  %v5020_v52 = vld [vmem:[#allocation5 + $0x32c] sm:$0xf]  ;;  %v5896_v61 = vpop.f32.mrf.mxu1  ;;  %v4517_v29 = vor.u32 %v5177_v22, %v4516_v21  ;;  %v5153_v21 = vld [vmem:[#allocation8 + $0x12c] sm:$0xf0] }
  0xed   : > { %1915 = vmatpush.bf16.msrb.mxu1 %v3869_v34  ;;  %v4186_v34 = vld [vmem:[#allocation5 + $0x578] sm:$0xf0]  ;;  %v3901_v5 = vor.u32 %v5020_v52, %v3898_v57  ;;  %v4468_v52 = vld [vmem:[#allocation8 + $0x180] sm:$0xf] }
  0xee   : > { %1894 = vmatpush.bf16.msrb.mxu2 %v3501_v39  ;;  %1866 = vmatpush.bf16.msrb.mxu3 %v4137_v44  ;;  %v4189_v44 = vor.u32 %v5092_v33, %v4186_v34 }
  0xef   : > { %1909 = vmatmul.bf16.vlgmr.msrb.gmra.mxu0 %v5858_v8  ;;  %v3786_v8 = vld [vmem:[#allocation5 + $0x258] sm:$0xf0] }
  0xf0   : > { %1957 = vmatpush.bf16.msra.mxu0 %v4253_v58  ;;  %v3789_v39 = vor.u32 %v4992_v32, %v3786_v8  ;;  %v5052_v58 = vld [vmem:[#allocation5 + $0x42c] sm:$0xf]  ;;  %v5900_v10 = vpop.f32.mrf.mxu2  ;;  %v5173_v32 = vld [vmem:[#allocation8 + $0x1cc] sm:$0xf0] }
  0xf1   : > { %1916 = vmatpush.bf16.msrb.mxu1 %v3853_v51  ;;  %1867 = vmatmul.bf16.vlgmr.msrb.gmra.mxu3 %v5874_v42  ;;  %v4045_v51 = vor.u32 %v5056_v41, %v4042_v43  ;;  %v4029_v6 = vor.u32 %v5052_v58, %v4026_v59  ;;  %v4484_v43 = vld [vmem:[#allocation8 + $0x1a0] sm:$0xf]  ;;  %v5129_v59 = vld [vmem:[#allocation8 + $0x6c] sm:$0xf0] }
  0xf2   : > { %1929 = vmatpush.bf16.msra.mxu3 %v3997_v47  ;;  %1943 = vmatpush.bf16.msra.mxu2 %v4125_v48  ;;  %v5088_v47 = vld [vmem:[#allocation5 + $0x54c] sm:$0xf]  ;;  %v4170_v48 = vld [vmem:[#allocation5 + $0x558] sm:$0xf0]  ;;  %v1604_v30 = vpop.f32.mrf.mxu0  ;;  %v1644_v33 = vpop.f32.mrf.mxu3  ;;  %v4324_v58 = vld [vmem:[#allocation8 + $0x60] sm:$0xf] }
  0xf3   : > { %1895 = vmatmul.bf16.vlgmr.msrb.gmra.mxu2 %v5850_v55  ;;  %v4202_v55 = vld [vmem:[#allocation5 + $0x598] sm:$0xf0]  ;;  %v4173_v62 = vor.u32 %v5088_v47, %v4170_v48  ;;  %v4340_v47 = vld [vmem:[#allocation8 + $0x80] sm:$0xf]  ;;  %v5133_v48 = vld [vmem:[#allocation8 + $0x8c] sm:$0xf0] }
  0xf4   : > { %1958 = vmatpush.bf16.msra.mxu0 %v4237_v7  ;;  %v4205_v31 = vor.u32 %v5096_v23, %v4202_v55  ;;  %v5016_v7 = vld [vmem:[#allocation5 + $0x30c] sm:$0xf]  ;;  %v1618_v8 = vpop.f32.mrf.mxu1 }
  0xf5   : > { %1917 = vmatpush.bf16.msrb.mxu1 %v3837_v3  ;;  %v5112_v3 = vld [vmem:[#allocation5 + $0x60c] sm:$0xf]  ;;  %v3885_v23 = vor.u32 %v5016_v7, %v3882_v12 }
  0xf6   : > { %1930 = vmatpush.bf16.msra.mxu3 %v3981_v0  ;;  %1944 = vmatpush.bf16.msra.mxu2 %v4109_v1  ;;  %v3754_v0 = vld [vmem:[#allocation5 + $0x218] sm:$0xf0]  ;;  %v5084_v1 = vld [vmem:[#allocation5 + $0x52c] sm:$0xf]  ;;  %v4269_v19 = vor.u32 %v5112_v3, %v4266_v4  ;;  %v4308_v4 = vld [vmem:[#allocation8 + $0x40] sm:$0xf] }
  0xf7   : > { %v3757_v11 = vor.u32 %v4984_v63, %v3754_v0  ;;  %v4157_v15 = vor.u32 %v5084_v1, %v4154_v2  ;;  %v4452_v63 = vld [vmem:[#allocation8 + $0x160] sm:$0xf]  ;;  %v5161_v0 = vld [vmem:[#allocation8 + $0x16c] sm:$0xf0]  ;;  %v4325_v1 = vor.u32 %v5129_v59, %v4324_v58  ;;  %v5131_v59 = vld [vmem:[#allocation8 + $0x84] sm:$0xf] }
  0xf8   : > { %1959 = vmatpush.bf16.msra.mxu0 %v4221_v20  ;;  %v4138_v20 = vld [vmem:[#allocation5 + $0x518] sm:$0xf0]  ;;  %v1632_v41 = vpop.f32.mrf.mxu2  ;;  %v5205_v58 = vld [vmem:[#allocation8 + $0x2cc] sm:$0xf0] }
  0xf9   : > { %1918 = vmatpush.bf16.msrb.mxu1 %v3821_v16  ;;  %v4388_v16 = vld [vmem:[#allocation8 + $0xe0] sm:$0xf]  ;;  %v4141_v26 = vor.u32 %v5080_v18, %v4138_v20  ;;  %v5121_v18 = vld [vmem:[#allocation8 + $0x2c] sm:$0xf0] }
  0xfa   : > { %1931 = vmatpush.bf16.msra.mxu3 %v3965_v13  ;;  %1945 = vmatpush.bf16.msra.mxu2 %v4093_v14  ;;  %v5048_v13 = vld [vmem:[#allocation5 + $0x40c] sm:$0xf]  ;;  %v4010_v14 = vld [vmem:[#allocation5 + $0x418] sm:$0xf0]  ;;  %v4420_v20 = vld [vmem:[#allocation8 + $0x120] sm:$0xf] }
  0xfb   : > { %v4013_v55 = vor.u32 %v5048_v13, %v4010_v14 }
  0xfc   : > { %1960 = vmatpush.bf16.msra.mxu0 %v4205_v31  ;;  %v4500_v31 = vld [vmem:[#allocation8 + $0x1c0] sm:$0xf] }
  0xfd   : > { %1919 = vmatpush.bf16.msrb.mxu1 %v3805_v27  ;;  %v4372_v27 = vld [vmem:[#allocation8 + $0xc0] sm:$0xf]  ;;  %v4501_v40 = vor.u32 %v5173_v32, %v4500_v31  ;;  %v5175_v32 = vld [vmem:[#allocation8 + $0x1e4] sm:$0xf] }
  0xfe   : > { %1932 = vmatpush.bf16.msra.mxu3 %v3949_v24  ;;  %1946 = vmatpush.bf16.msra.mxu2 %v4077_v25  ;;  %v4389_v24 = vor.u32 %v5145_v17, %v4388_v16  ;;  %v601_v25 = vperm.slane %v5898_v9, 0  ;;  %v4373_v34 = vor.u32 %v5141_v28, %v4372_v27  ;;  %v4292_v17 = vld [vmem:[#allocation8 + $0x20] sm:$0xf]  ;;  %v5143_v27 = vld [vmem:[#allocation8 + $0xe4] sm:$0xf] }
  0xff   : > { %v4390_v28 = vld [vmem:[#allocation8 + $0xf0] sm:$0xf0] }
 0x100   : > { %1961 = vmatpush.bf16.msra.mxu0 %v4189_v44  ;;  %v5169_v44 = vld [vmem:[#allocation8 + $0x1ac] sm:$0xf0] }
 0x101   : > { %1920 = vmatpush.bf16.msrb.mxu1 %v3789_v39  ;;  %v5137_v39 = vld [vmem:[#allocation8 + $0xac] sm:$0xf0] }
 0x102   : > { %1933 = vmatpush.bf16.msra.mxu3 %v3933_v35  ;;  %1947 = vmatpush.bf16.msra.mxu2 %v4061_v36  ;;  %v1603_v35 = vadd.f32 %v1602_v53, %v601_v25  ;;  %v1605_v36 = vadd.f32 %v1604_v30, %v601_v25  ;;  %v5165_v53 = vld [vmem:[#allocation8 + $0x18c] sm:$0xf0]  ;;  %v4276_v25 = vld [vmem:[#allocation8] sm:$0xf] }
 0x103   : > { %v5149_v30 = vld [vmem:[#allocation8 + $0x10c] sm:$0xf0] }
 0x104   : > { %1962 = vmatpush.bf16.msra.mxu0 %v4173_v62  ;;  %v1617_v45 = vadd.f32 %v5896_v61, %v1603_v35  ;;  %v1619_v46 = vadd.f32 %v1618_v8, %v1605_v36  ;;  %v1646_v62 = vpop.f32.mrf.mxu3  ;;  %v1686_v61 = vpop.f32.mrf.mxu2  ;;  %v4518_v8 = vld [vmem:[#allocation8 + $0x1f0] sm:$0xf0]  ;;  %v4393_v36 = vor.u32 %v5143_v27, %v4390_v28  ;;  %v4580_v27 = vld [vmem:[#allocation8 + $0x260] sm:$0xf]  ;;  %v5119_v28 = vld [vmem:[#allocation8 + $0x24] sm:$0xf] }
 0x105   : > { %1921 = vmatpush.bf16.msrb.mxu1 %v3773_v56 }
 0x106   : > { %1934 = vmatpush.bf16.msra.mxu3 %v3917_v49  ;;  %1948 = vmatpush.bf16.msra.mxu2 %v4045_v51  ;;  %v4485_v49 = vor.u32 %v5169_v44, %v4484_v43  ;;  %v1631_v57 = vadd.f32 %v5900_v10, %v1617_v45  ;;  %v5157_v10 = vld [vmem:[#allocation8 + $0x14c] sm:$0xf0]  ;;  %v5171_v44 = vld [vmem:[#allocation8 + $0x1c4] sm:$0xf] }
 0x108   : > { %1963 = vmatpush.bf16.msra.mxu0 %v4157_v15  ;;  %v1658_v51 = vpop.f32.mrf.mxu0  ;;  %v1645_v2 = vadd.f32 %v1644_v33, %v1631_v57 }
 0x109   : > { %1922 = vmatpush.bf16.msrb.mxu1 %v3757_v11  ;;  %v1672_v56 = vpop.f32.mrf.mxu1  ;;  %v4436_v11 = vld [vmem:[#allocation8 + $0x140] sm:$0xf] }
 0x10a   : > { %1935 = vmatpush.bf16.msra.mxu3 %v3901_v5  ;;  %1949 = vmatpush.bf16.msra.mxu2 %v4029_v6  ;;  %v5125_v5 = vld [vmem:[#allocation8 + $0x4c] sm:$0xf0]  ;;  %v4453_v6 = vor.u32 %v5161_v0, %v4452_v63  ;;  %v1659_v12 = vadd.f32 %v1658_v51, %v1645_v2  ;;  %v4358_v51 = vld [vmem:[#allocation8 + $0xb0] sm:$0xf0] }
 0x10b   : > { %v4309_v15 = vor.u32 %v5125_v5, %v4308_v4  ;;  %v4470_v2 = vld [vmem:[#allocation8 + $0x190] sm:$0xf0]  ;;  %v4612_v4 = vld [vmem:[#allocation8 + $0x2a0] sm:$0xf]  ;;  %v5201_v5 = vld [vmem:[#allocation8 + $0x2ac] sm:$0xf0] }
 0x10c   : > { %1923 = vmatmul.bf16.vlgmr.msrb.gmra.mxu1 %v5848_v54  ;;  %1964 = vmatpush.bf16.msra.mxu0 %v4141_v26  ;;  %v4357_v54 = vor.u32 %v5137_v39, %v4356_v38  ;;  %v1673_v22 = vadd.f32 %v1672_v56, %v1659_v12  ;;  %v5117_v26 = vld [vmem:[#allocation8 + $0xc] sm:$0xf0]  ;;  %v5139_v39 = vld [vmem:[#allocation8 + $0xc4] sm:$0xf] }
 0x10d   : > { %1978 = vmatpush.bf16.msra.mxu1 %v4269_v19  ;;  %v4437_v19 = vor.u32 %v5157_v10, %v4436_v11  ;;  %v4277_v33 = vor.u32 %v5117_v26, %v4276_v25  ;;  %v5167_v56 = vld [vmem:[#allocation8 + $0x1a4] sm:$0xf]  ;;  %v4613_v10 = vor.u32 %v5201_v5, %v4612_v4 }
 0x10e   : > { %1936 = vmatpush.bf16.msra.mxu3 %v3885_v23  ;;  %1950 = vmatpush.bf16.msra.mxu2 %v4013_v55  ;;  %v1688_v23 = vpop.f32.mrf.mxu2  ;;  %v4293_v55 = vor.u32 %v5121_v18, %v4292_v17  ;;  %v1687_v31 = vadd.f32 %v1686_v61, %v1673_v22  ;;  %v5159_v12 = vld [vmem:[#allocation8 + $0x164] sm:$0xf]  ;;  %v4310_v17 = vld [vmem:[#allocation8 + $0x50] sm:$0xf0] }
 0x10f   : > { %1965 = vmatmul.bf16.vlgmr.msra.gmra.mxu0 %v5874_v42  ;;  %v4469_v42 = vor.u32 %v5165_v53, %v4468_v52  ;;  %v5155_v22 = vld [vmem:[#allocation8 + $0x144] sm:$0xf] }
 0x110   : > { %v1660_v7 = vpop.f32.mrf.mxu0  ;;  %v5911_v35 = vpop.f32.mrf.mxu3  ;;  %v1985_v43 = vmax.f32 %v1687_v31, 0.0 }
 0x111   : > { %2789 = vmatpush.bf16.msrb.mxu1 %v4517_v29  ;;  %1937 = vmatmul.bf16.vlgmr.msra.gmra.mxu3 %v5852_v60  ;;  %v4341_v60 = vor.u32 %v5133_v48, %v4340_v47  ;;  %v1674_v14 = vpop.f32.mrf.mxu1  ;;  %v4404_v29 = vld [vmem:[#allocation8 + $0x100] sm:$0xf]  ;;  %v5209_v48 = vld [vmem:[#allocation8 + $0x2ec] sm:$0xf0] }
 0x112   : > { %2775 = vmatpush.bf16.msrb.mxu3 %v4389_v24  ;;  %1951 = vmatmul.bf16.vlgmr.msra.gmra.mxu2 %v5872_v37  ;;  %v1633_v37 = vadd.f32 %v1632_v41, %v1619_v46  ;;  %v4405_v38 = vor.u32 %v5149_v30, %v4404_v29  ;;  %v4521_v41 = vor.u32 %v5175_v32, %v4518_v8  ;;  %v4644_v47 = vld [vmem:[#allocation8 + $0x2e0] sm:$0xf]  ;;  %v4294_v29 = vld [vmem:[#allocation8 + $0x30] sm:$0xf0]  ;;  %v5151_v8 = vld [vmem:[#allocation8 + $0x124] sm:$0xf] }
 0x113   : > { %v4645_v53 = vor.u32 %v5209_v48, %v4644_v47  ;;  %v5146_v48 = vld [vmem:[#allocation8 + $0xf4] sm:$0xf0] }
 0x114   : > { %v1647_v3 = vadd.f32 %v1646_v62, %v1633_v37  ;;  %v4628_v37 = vld [vmem:[#allocation8 + $0x2c0] sm:$0xf] }
 0x115   : > { %2790 = vmatpush.bf16.msrb.mxu1 %v4501_v40  ;;  %v4374_v40 = vld [vmem:[#allocation8 + $0xd0] sm:$0xf0]  ;;  %2803 = vmatpush.bf16.msrb.mxu2 %v4645_v53  ;;  %v4629_v61 = vor.u32 %v5205_v58, %v4628_v37  ;;  %v5185_v37 = vld [vmem:[#allocation8 + $0x22c] sm:$0xf0] }
 0x116   : > { %2776 = vmatpush.bf16.msrb.mxu3 %v4373_v34  ;;  %v1661_v13 = vadd.f32 %v1660_v7, %v1647_v3  ;;  %v4377_v46 = vor.u32 %v5139_v39, %v4374_v40  ;;  %v1714_v63 = vpop.f32.mrf.mxu2  ;;  %v4326_v7 = vld [vmem:[#allocation8 + $0x70] sm:$0xf0]  ;;  %v4564_v39 = vld [vmem:[#allocation8 + $0x240] sm:$0xf]  ;;  %v5189_v40 = vld [vmem:[#allocation8 + $0x24c] sm:$0xf0] }
 0x118   : > { %v1675_v16 = vadd.f32 %v1674_v14, %v1661_v13  ;;  %v1702_v0 = vpop.f32.mrf.mxu3  ;;  %v4454_v13 = vld [vmem:[#allocation8 + $0x170] sm:$0xf0] }
 0x119   : > { %2791 = vmatpush.bf16.msrb.mxu1 %v4485_v49  ;;  %v5135_v49 = vld [vmem:[#allocation8 + $0xa4] sm:$0xf]  ;;  %2804 = vmatpush.bf16.msrb.mxu2 %v4629_v61  ;;  %v4457_v18 = vor.u32 %v5159_v12, %v4454_v13  ;;  %v4380_v61 = vld [vmem:[#allocation8 + $0xc8] sm:$0xf]  ;;  %v5138_v13 = vld [vmem:[#allocation8 + $0xb4] sm:$0xf0] }
 0x11a   : > { %2777 = vmatpush.bf16.msrb.mxu3 %v4357_v54  ;;  %v1689_v24 = vadd.f32 %v1688_v23, %v1675_v16  ;;  %v4502_v54 = vld [vmem:[#allocation8 + $0x1d0] sm:$0xf0]  ;;  %v4361_v57 = vor.u32 %v5135_v49, %v4358_v51  ;;  %v5123_v16 = vld [vmem:[#allocation8 + $0x44] sm:$0xf]  ;;  %v4364_v12 = vld [vmem:[#allocation8 + $0xa8] sm:$0xf] }
 0x11b   : > { %v4505_v52 = vor.u32 %v5171_v44, %v4502_v54  ;;  %v4438_v23 = vld [vmem:[#allocation8 + $0x150] sm:$0xf0]  ;;  %v4313_v26 = vor.u32 %v5123_v16, %v4310_v17  ;;  %v4396_v44 = vld [vmem:[#allocation8 + $0xe8] sm:$0xf]  ;;  %v5147_v49 = vld [vmem:[#allocation8 + $0x104] sm:$0xf] }
 0x11c   : > { %4273 = vmatmul.msk.bf16.vlgmr.msra.gmra.mxu1 %vm1589_vm0, %v5864_v50  ;;  %v4421_v50 = vor.u32 %v5153_v21, %v4420_v20  ;;  %v1989_v34 = vmax.f32 %v1689_v24, 0.0  ;;  %v602_v24 = vperm.slane %v5898_v9, 1  ;;  %v4441_v30 = vor.u32 %v5155_v22, %v4438_v23  ;;  %v4406_v51 = vld [vmem:[#allocation8 + $0x110] sm:$0xf0] }
 0x11d   : > { %2792 = vmatpush.bf16.msrb.mxu1 %v4469_v42  ;;  %v4342_v42 = vld [vmem:[#allocation8 + $0x90] sm:$0xf0]  ;;  %2805 = vmatpush.bf16.msrb.mxu2 %v4613_v10 }
 0x11e   : > { %2778 = vmatpush.bf16.msrb.mxu3 %v4341_v60  ;;  %v5913_v45 = vpack.c.bf16 %v1989_v34, %v1985_v43  ;;  %v4486_v60 = vld [vmem:[#allocation8 + $0x1b0] sm:$0xf0]  ;;  %v4345_v3 = vor.u32 %v5131_v59, %v4342_v42  ;;  %v1716_v25 = vpop.f32.mrf.mxu2  ;;  %v1701_v34 = vadd.f32 %v5911_v35, %v602_v24  ;;  %v4397_v59 = vor.u32 %v5146_v48, %v4396_v44  ;;  %v4316_v44 = vld [vmem:[#allocation8 + $0x48] sm:$0xf]  ;;  %v5126_v48 = vld [vmem:[#allocation8 + $0x54] sm:$0xf0] }
 0x11f   : > { %v4489_v62 = vor.u32 %v5167_v56, %v4486_v60  ;;  %v4278_v43 = vld [vmem:[#allocation8 + $0x10] sm:$0xf0]  ;;  %v4409_v42 = vor.u32 %v5147_v49, %v4406_v51  ;;  %v5195_v49 = vld [vmem:[#allocation8 + $0x284] sm:$0xf] }
 0x120   : > { %v4630_v22 = vld [vmem:[#allocation8 + $0x2d0] sm:$0xf0] }
 0x121   : > { %2793 = vmatpush.bf16.msrb.mxu1 %v4453_v6  ;;  %v5127_v6 = vld [vmem:[#allocation8 + $0x64] sm:$0xf] }
 0x122   : > { %2779 = vmatpush.bf16.msrb.mxu3 %v4325_v1  ;;  %v5163_v1 = vld [vmem:[#allocation8 + $0x184] sm:$0xf]  ;;  %v4329_v14 = vor.u32 %v5127_v6, %v4326_v7 }
 0x123   : > { %v4473_v11 = vor.u32 %v5163_v1, %v4470_v2  ;;  %v5207_v7 = vld [vmem:[#allocation8 + $0x2e4] sm:$0xf] }
 0x125   : > { %2794 = vmatpush.bf16.msrb.mxu1 %v4437_v19  ;;  %v5197_v19 = vld [vmem:[#allocation8 + $0x28c] sm:$0xf0] }
 0x126   : > { %2780 = vmatpush.bf16.msrb.mxu3 %v4309_v15  ;;  %v4596_v15 = vld [vmem:[#allocation8 + $0x280] sm:$0xf] }
 0x128   : > { %v1728_v20 = vpop.f32.mrf.mxu0 }
 0x129   : > { %2795 = vmatpush.bf16.msrb.mxu1 %v4421_v50  ;;  %v5193_v50 = vld [vmem:[#allocation8 + $0x26c] sm:$0xf0]  ;;  %v1742_v32 = vpop.f32.mrf.mxu1 }
 0x12a   : > { %2781 = vmatpush.bf16.msrb.mxu3 %v4293_v55  ;;  %v4597_v55 = vor.u32 %v5197_v19, %v4596_v15  ;;  %v4581_v31 = vor.u32 %v5193_v50, %v4580_v27  ;;  %v4348_v19 = vld [vmem:[#allocation8 + $0x88] sm:$0xf] }
 0x12c   : > { %2806 = vmatpush.bf16.msrb.mxu2 %v4597_v55  ;;  %v5134_v55 = vld [vmem:[#allocation8 + $0x94] sm:$0xf0] }
 0x12d   : > { %2796 = vmatpush.bf16.msrb.mxu1 %v4405_v38  ;;  %v4297_v38 = vor.u32 %v5119_v28, %v4294_v29  ;;  %v4349_v29 = vor.u32 %v5134_v55, %v4348_v19  ;;  %v5225_v19 = vld [vmem:[#allocation8 + $0x36c] sm:$0xf0]  ;;  %v4398_v55 = vld [vmem:[#allocation8 + $0xf8] sm:$0xf0] }
 0x12e   : > { %2782 = vmatpush.bf16.msrb.mxu3 %v4277_v33  ;;  %v4422_v33 = vld [vmem:[#allocation8 + $0x130] sm:$0xf0] }
 0x12f   : > { %v4425_v54 = vor.u32 %v5151_v8, %v4422_v33  ;;  %v5130_v33 = vld [vmem:[#allocation8 + $0x74] sm:$0xf0] }
 0x130   : > { %v5916_v21 = vpop.f32.mrf.mxu3  ;;  %2807 = vmatpush.bf16.msrb.mxu2 %v4581_v31  ;;  %v1730_v56 = vpop.f32.mrf.mxu0  ;;  %v5199_v31 = vld [vmem:[#allocation8 + $0x2a4] sm:$0xf] }
 0x131   : > { %2845 = vmatpush.bf16.msra.mxu1 %v4521_v41  ;;  %2783 = vmatmul.bf16.vlgmr.msrb.gmra.mxu3 %v5913_v45  ;;  %v5115_v41 = vld [vmem:[#allocation8 + $0x4] sm:$0xf]  ;;  %v1744_v2 = vpop.f32.mrf.mxu1 }
 0x132   : > { %2831 = vmatpush.bf16.msra.mxu3 %v4393_v36  ;;  %v1703_v36 = vadd.f32 %v1702_v0, %v602_v24  ;;  %v4281_v60 = vor.u32 %v5115_v41, %v4278_v43  ;;  %v5142_v0 = vld [vmem:[#allocation8 + $0xd4] sm:$0xf0] }
 0x133   : > { %v4381_v5 = vor.u32 %v5142_v0, %v4380_v61  ;;  %v5178_v41 = vld [vmem:[#allocation8 + $0x1f4] sm:$0xf0]  ;;  %v4582_v61 = vld [vmem:[#allocation8 + $0x270] sm:$0xf0] }
 0x134   : > { %v1717_v53 = vadd.f32 %v1716_v25, %v1703_v36  ;;  %v1770_v35 = vpop.f32.mrf.mxu2  ;;  %v4772_v25 = vld [vmem:[#allocation8 + $0x3e0] sm:$0xf] }
 0x135   : > { %2846 = vmatpush.bf16.msra.mxu1 %v4505_v52  ;;  %v1715_v52 = vadd.f32 %v1714_v63, %v1701_v34  ;;  %v4532_v63 = vld [vmem:[#allocation8 + $0x200] sm:$0xf] }
 0x136   : > { %2832 = vmatpush.bf16.msra.mxu3 %v4377_v46  ;;  %v4565_v46 = vor.u32 %v5189_v40, %v4564_v39  ;;  %v1731_v1 = vadd.f32 %v1730_v56, %v1717_v53  ;;  %v4756_v36 = vld [vmem:[#allocation8 + $0x3c0] sm:$0xf]  ;;  %v4524_v40 = vld [vmem:[#allocation8 + $0x1e8] sm:$0xf]  ;;  %v5233_v56 = vld [vmem:[#allocation8 + $0x3ac] sm:$0xf0] }
 0x137   : > { %v1729_v58 = vadd.f32 %v1728_v20, %v1715_v52  ;;  %v5203_v20 = vld [vmem:[#allocation8 + $0x2c4] sm:$0xf]  ;;  %v4525_v51 = vor.u32 %v5178_v41, %v4524_v40  ;;  %v4598_v52 = vld [vmem:[#allocation8 + $0x290] sm:$0xf0]  ;;  %v4740_v53 = vld [vmem:[#allocation8 + $0x3a0] sm:$0xf] }
 0x138   : > { %v1758_v47 = vpop.f32.mrf.mxu3  ;;  %2808 = vmatpush.bf16.msrb.mxu2 %v4565_v46  ;;  %v1745_v16 = vadd.f32 %v1744_v2, %v1731_v1  ;;  %v4633_v24 = vor.u32 %v5203_v20, %v4630_v22  ;;  %v5122_v1 = vld [vmem:[#allocation8 + $0x34] sm:$0xf0] }
 0x139   : > { %2847 = vmatpush.bf16.msra.mxu1 %v4489_v62  ;;  %v1743_v4 = vadd.f32 %v1742_v32, %v1729_v58  ;;  %v4614_v32 = vld [vmem:[#allocation8 + $0x2b0] sm:$0xf0]  ;;  %v4741_v58 = vor.u32 %v5233_v56, %v4740_v53  ;;  %v5166_v22 = vld [vmem:[#allocation8 + $0x194] sm:$0xf0]  ;;  %v603_v53 = vperm.slane %v5898_v9, 2 }
 0x13a   : > { %2833 = vmatpush.bf16.msra.mxu3 %v4361_v57  ;;  %v4548_v57 = vld [vmem:[#allocation8 + $0x220] sm:$0xf]  ;;  %v1759_v17 = vadd.f32 %v1758_v47, %v1745_v16  ;;  %v4617_v34 = vor.u32 %v5199_v31, %v4614_v32  ;;  %v4476_v16 = vld [vmem:[#allocation8 + $0x188] sm:$0xf]  ;;  %v5162_v31 = vld [vmem:[#allocation8 + $0x174] sm:$0xf0] }
 0x13b   : > { %v4549_v62 = vor.u32 %v5185_v37, %v4548_v57  ;;  %v1757_v15 = vadd.f32 %v5916_v21, %v1743_v4  ;;  %v5174_v57 = vld [vmem:[#allocation8 + $0x1d4] sm:$0xf0]  ;;  %v4601_v37 = vor.u32 %v5195_v49, %v4598_v52  ;;  %v4492_v4 = vld [vmem:[#allocation8 + $0x1a8] sm:$0xf]  ;;  %v5140_v32 = vld [vmem:[#allocation8 + $0xcc] sm:$0xf] }
 0x13c   : > { %v1772_v23 = vpop.f32.mrf.mxu2  ;;  %v4366_v49 = vld [vmem:[#allocation8 + $0xb8] sm:$0xf0] }
 0x13d   : > { %2848 = vmatpush.bf16.msra.mxu1 %v4473_v11  ;;  %2809 = vmatpush.bf16.msrb.mxu2 %v4549_v62  ;;  %v4646_v11 = vld [vmem:[#allocation8 + $0x2f0] sm:$0xf0]  ;;  %v1771_v27 = vadd.f32 %v1770_v35, %v1757_v15  ;;  %v1773_v28 = vadd.f32 %v1772_v23, %v1759_v17  ;;  %v5191_v62 = vld [vmem:[#allocation8 + $0x264] sm:$0xf]  ;;  %v5144_v23 = vld [vmem:[#allocation8 + $0xec] sm:$0xf] }
 0x13e   : > { %2834 = vmatpush.bf16.msra.mxu3 %v4345_v3  ;;  %v5181_v3 = vld [vmem:[#allocation8 + $0x20c] sm:$0xf0]  ;;  %v4585_v2 = vor.u32 %v5191_v62, %v4582_v61  ;;  %v4350_v61 = vld [vmem:[#allocation8 + $0x98] sm:$0xf0] }
 0x13f   : > { %v4533_v6 = vor.u32 %v5181_v3, %v4532_v63  ;;  %v4724_v63 = vld [vmem:[#allocation8 + $0x380] sm:$0xf]  ;;  %v5229_v3 = vld [vmem:[#allocation8 + $0x38c] sm:$0xf0] }
 0x140   : > { %v1784_v10 = vpop.f32.mrf.mxu3  ;;  %v5213_v62 = vld [vmem:[#allocation8 + $0x30c] sm:$0xf0] }
 0x141   : > { %2849 = vmatpush.bf16.msra.mxu1 %v4457_v18  ;;  %2810 = vmatpush.bf16.msrb.mxu2 %v4533_v6  ;;  %v4365_v18 = vor.u32 %v5138_v13, %v4364_v12  ;;  %v1785_v21 = vadd.f32 %v1784_v10, %v1771_v27  ;;  %v4725_v6 = vor.u32 %v5229_v3, %v4724_v63  ;;  %v5118_v12 = vld [vmem:[#allocation8 + $0x14] sm:$0xf0]  ;;  %v5187_v13 = vld [vmem:[#allocation8 + $0x244] sm:$0xf]  ;;  %v4550_v27 = vld [vmem:[#allocation8 + $0x230] sm:$0xf0] }
 0x142   : > { %2835 = vmatpush.bf16.msra.mxu3 %v4329_v14  ;;  %v4649_v14 = vor.u32 %v5207_v7, %v4646_v11  ;;  %v4284_v11 = vld [vmem:[#allocation8 + $0x8] sm:$0xf] }
 0x145   : > { %2850 = vmatpush.bf16.msra.mxu1 %v4441_v30  ;;  %2859 = vmatpush.bf16.msra.mxu2 %v4649_v14  ;;  %v4332_v30 = vld [vmem:[#allocation8 + $0x68] sm:$0xf]  ;;  %v4566_v14 = vld [vmem:[#allocation8 + $0x250] sm:$0xf0] }
 0x146   : > { %2836 = vmatpush.bf16.msra.mxu3 %v4313_v26  ;;  %v5241_v26 = vld [vmem:[#allocation8 + $0x3ec] sm:$0xf0]  ;;  %v4333_v47 = vor.u32 %v5130_v33, %v4332_v30  ;;  %v4569_v17 = vor.u32 %v5187_v13, %v4566_v14 }
 0x147   : > { %v4773_v50 = vor.u32 %v5241_v26, %v4772_v25  ;;  %v4285_v25 = vor.u32 %v5118_v12, %v4284_v11  ;;  %v5183_v26 = vld [vmem:[#allocation8 + $0x224] sm:$0xf]  ;;  %v5221_v30 = vld [vmem:[#allocation8 + $0x34c] sm:$0xf0]  ;;  %v4412_v11 = vld [vmem:[#allocation8 + $0x108] sm:$0xf] }
 0x148   : > { %v1786_v8 = vpop.f32.mrf.mxu3  ;;  %v5925_v7 = vpop.f32.mrf.mxu0  ;;  %v4553_v33 = vor.u32 %v5183_v26, %v4550_v27  ;;  %v5128_v12 = vld [vmem:[#allocation8 + $0x6c] sm:$0xf] }
 0x149   : > { %2851 = vmatpush.bf16.msra.mxu1 %v4425_v54  ;;  %2860 = vmatpush.bf16.msra.mxu2 %v4633_v24  ;;  %v1787_v39 = vadd.f32 %v1786_v8, %v1773_v28  ;;  %v1986_v54 = vmax.f32 %v1785_v21, 0.0  ;;  %v1798_v20 = vpop.f32.mrf.mxu1  ;;  %v4401_v28 = vor.u32 %v5144_v23, %v4398_v55  ;;  %v4460_v21 = vld [vmem:[#allocation8 + $0x168] sm:$0xf]  ;;  %v4382_v8 = vld [vmem:[#allocation8 + $0xd8] sm:$0xf0] }
 0x14a   : > { %2837 = vmatpush.bf16.msra.mxu3 %v4297_v38  ;;  %2817 = vmatpush.bf16.msrb.mxu0 %v4773_v50  ;;  %v5237_v38 = vld [vmem:[#allocation8 + $0x3cc] sm:$0xf0]  ;;  %v4477_v50 = vor.u32 %v5166_v22, %v4476_v16  ;;  %v4461_v41 = vor.u32 %v5162_v31, %v4460_v21  ;;  %v1799_v63 = vadd.f32 %v1798_v20, %v603_v53  ;;  %v5235_v16 = vld [vmem:[#allocation8 + $0x3c4] sm:$0xf]  ;;  %v5176_v22 = vld [vmem:[#allocation8 + $0x1ec] sm:$0xf] }
 0x14b   : > { %v4757_v43 = vor.u32 %v5237_v38, %v4756_v36  ;;  %v1990_v46 = vmax.f32 %v1787_v39, 0.0  ;;  %v5179_v38 = vld [vmem:[#allocation8 + $0x204] sm:$0xf]  ;;  %v4534_v39 = vld [vmem:[#allocation8 + $0x210] sm:$0xf0] }
 0x14c   : > { %v4526_v20 = vld [vmem:[#allocation8 + $0x1f8] sm:$0xf0]  ;;  %v5124_v26 = vld [vmem:[#allocation8 + $0x4c] sm:$0xf]  ;;  %v4742_v21 = vld [vmem:[#allocation8 + $0x3b0] sm:$0xf0] }
 0x14d   : > { %2852 = vmatpush.bf16.msra.mxu1 %v4409_v42  ;;  %2861 = vmatpush.bf16.msra.mxu2 %v4617_v34  ;;  %v5922_v35 = vpack.c.bf16 %v1990_v46, %v1986_v54  ;;  %v4300_v42 = vld [vmem:[#allocation8 + $0x28] sm:$0xf]  ;;  %v4676_v54 = vld [vmem:[#allocation8 + $0x320] sm:$0xf]  ;;  %v5217_v46 = vld [vmem:[#allocation8 + $0x32c] sm:$0xf0]  ;;  %v4529_v27 = vor.u32 %v5176_v22, %v4526_v20 }
 0x14e   : > { %2838 = vmatpush.bf16.msra.mxu3 %v4281_v60  ;;  %2818 = vmatpush.bf16.msrb.mxu0 %v4757_v43  ;;  %v4508_v60 = vld [vmem:[#allocation8 + $0x1c8] sm:$0xf]  ;;  %v4301_v10 = vor.u32 %v5122_v1, %v4300_v42  ;;  %v4385_v43 = vor.u32 %v5140_v32, %v4382_v8  ;;  %v4677_v52 = vor.u32 %v5217_v46, %v4676_v54  ;;  %v4660_v42 = vld [vmem:[#allocation8 + $0x300] sm:$0xf]  ;;  %v5239_v1 = vld [vmem:[#allocation8 + $0x3e4] sm:$0xf] }
 0x14f   : > { %2797 = vmatmul.bf16.vlgmr.msrb.gmra.mxu1 %v5922_v35  ;;  %v4509_v0 = vor.u32 %v5174_v57, %v4508_v60  ;;  %v4428_v60 = vld [vmem:[#allocation8 + $0x128] sm:$0xf]  ;;  %v5154_v57 = vld [vmem:[#allocation8 + $0x134] sm:$0xf0]  ;;  %v5172_v31 = vld [vmem:[#allocation8 + $0x1cc] sm:$0xf] }
 0x150   : > { %v5927_v40 = vpop.f32.mrf.mxu0  ;;  %v4510_v32 = vld [vmem:[#allocation8 + $0x1d8] sm:$0xf0]  ;;  %v5215_v22 = vld [vmem:[#allocation8 + $0x324] sm:$0xf]  ;;  %v4678_v20 = vld [vmem:[#allocation8 + $0x330] sm:$0xf0] }
 0x151   : > { %2839 = vmatmul.bf16.vlgmr.msra.gmra.mxu3 %v5913_v45  ;;  %2901 = vmatpush.bf16.msrb.mxu1 %v4525_v51  ;;  %v4537_v51 = vor.u32 %v5179_v38, %v4534_v39  ;;  %v1800_v56 = vpop.f32.mrf.mxu1  ;;  %v4513_v38 = vor.u32 %v5172_v31, %v4510_v32  ;;  %v4302_v39 = vld [vmem:[#allocation8 + $0x38] sm:$0xf0]  ;;  %v604_v31 = vperm.slane %v5898_v9, 3  ;;  %v5152_v32 = vld [vmem:[#allocation8 + $0x12c] sm:$0xf] }
 0x152   : > { %2887 = vmatpush.bf16.msrb.mxu3 %v4397_v59  ;;  %v4317_v59 = vor.u32 %v5126_v48, %v4316_v44  ;;  %2862 = vmatpush.bf16.msra.mxu2 %v4601_v37  ;;  %v4444_v44 = vld [vmem:[#allocation8 + $0x148] sm:$0xf]  ;;  %v5136_v48 = vld [vmem:[#allocation8 + $0xac] sm:$0xf] }
 0x153   : > { %2819 = vmatpush.bf16.msrb.mxu0 %v4741_v58  ;;  %v4369_v58 = vor.u32 %v5136_v48, %v4366_v49 }
 0x154   : > { %v1812_v36 = vpop.f32.mrf.mxu3 }
 0x155   : > { %2902 = vmatpush.bf16.msrb.mxu1 %v4509_v0  ;;  %v4661_v0 = vor.u32 %v5213_v62, %v4660_v42  ;;  %v5164_v42 = vld [vmem:[#allocation8 + $0x18c] sm:$0xf]  ;;  %v4478_v62 = vld [vmem:[#allocation8 + $0x198] sm:$0xf0] }
 0x156   : > { %2888 = vmatpush.bf16.msrb.mxu3 %v4381_v5  ;;  %v5170_v5 = vld [vmem:[#allocation8 + $0x1b4] sm:$0xf0]  ;;  %2863 = vmatpush.bf16.msra.mxu2 %v4585_v2  ;;  %v4774_v2 = vld [vmem:[#allocation8 + $0x3f0] sm:$0xf0]  ;;  %v1840_v13 = vpop.f32.mrf.mxu2 }
 0x157   : > { %v4493_v15 = vor.u32 %v5170_v5, %v4492_v4  ;;  %2820 = vmatpush.bf16.msrb.mxu0 %v4725_v6  ;;  %v4777_v3 = vor.u32 %v5239_v1, %v4774_v2  ;;  %v4429_v5 = vor.u32 %v5154_v57, %v4428_v60  ;;  %v4286_v57 = vld [vmem:[#allocation8 + $0x18] sm:$0xf0] }
 0x158   : > { %v5932_v4 = vpop.f32.mrf.mxu0 }
 0x159   : > { %2903 = vmatpush.bf16.msrb.mxu1 %v4493_v15  ;;  %v4334_v15 = vld [vmem:[#allocation8 + $0x78] sm:$0xf0] }
 0x15a   : > { %2889 = vmatpush.bf16.msrb.mxu3 %v4365_v18  ;;  %v4708_v18 = vld [vmem:[#allocation8 + $0x360] sm:$0xf]  ;;  %2864 = vmatpush.bf16.msra.mxu2 %v4569_v17  ;;  %v4758_v17 = vld [vmem:[#allocation8 + $0x3d0] sm:$0xf0] }
 0x15b   : > { %v4709_v24 = vor.u32 %v5225_v19, %v4708_v18  ;;  %v1813_v18 = vadd.f32 %v1812_v36, %v1799_v63  ;;  %v1801_v19 = vadd.f32 %v1800_v56, %v603_v53  ;;  %v4761_v23 = vor.u32 %v5235_v16, %v4758_v17  ;;  %v5116_v53 = vld [vmem:[#allocation8 + $0xc] sm:$0xf]  ;;  %v4652_v16 = vld [vmem:[#allocation8 + $0x2e8] sm:$0xf]  ;;  %v5210_v17 = vld [vmem:[#allocation8 + $0x2f4] sm:$0xf0] }
 0x15c   : > { %v1814_v14 = vpop.f32.mrf.mxu3  ;;  %v4289_v1 = vor.u32 %v5116_v53, %v4286_v57  ;;  %v4481_v63 = vor.u32 %v5164_v42, %v4478_v62  ;;  %v5194_v53 = vld [vmem:[#allocation8 + $0x274] sm:$0xf0]  ;;  %v4572_v62 = vld [vmem:[#allocation8 + $0x248] sm:$0xf] }
 0x15d   : > { %2821 = vmatpush.bf16.msrb.mxu0 %v4709_v24  ;;  %2904 = vmatpush.bf16.msrb.mxu1 %v4477_v50  ;;  %v4318_v50 = vld [vmem:[#allocation8 + $0x58] sm:$0xf0] }
 0x15e   : > { %2890 = vmatpush.bf16.msrb.mxu3 %v4349_v29  ;;  %v4692_v29 = vld [vmem:[#allocation8 + $0x340] sm:$0xf]  ;;  %2865 = vmatpush.bf16.msra.mxu2 %v4553_v33  ;;  %v4321_v33 = vor.u32 %v5124_v26, %v4318_v50  ;;  %v1842_v49 = vpop.f32.mrf.mxu2  ;;  %v4653_v26 = vor.u32 %v5210_v17, %v4652_v16  ;;  %v4636_v50 = vld [vmem:[#allocation8 + $0x2c8] sm:$0xf]  ;;  %v5208_v17 = vld [vmem:[#allocation8 + $0x2ec] sm:$0xf] }
 0x15f   : > { %v4693_v34 = vor.u32 %v5221_v30, %v4692_v29  ;;  %2853 = vmatmul.bf16.vlgmr.msra.gmra.mxu1 %v5922_v35  ;;  %v1827_v29 = vadd.f32 %v5925_v7, %v1813_v18  ;;  %v1815_v30 = vadd.f32 %v1814_v14, %v1801_v19  ;;  %v5168_v7 = vld [vmem:[#allocation8 + $0x1ac] sm:$0xf] }
 0x160   : > { %v1884_v46 = vpop.f32.mrf.mxu0 }
 0x161   : > { %2822 = vmatpush.bf16.msrb.mxu0 %v4693_v34  ;;  %2905 = vmatpush.bf16.msrb.mxu1 %v4461_v41  ;;  %v5120_v34 = vld [vmem:[#allocation8 + $0x2c] sm:$0xf]  ;;  %v5227_v41 = vld [vmem:[#allocation8 + $0x384] sm:$0xf]  ;;  %v1829_v54 = vadd.f32 %v5927_v40, %v1815_v30  ;;  %v4662_v30 = vld [vmem:[#allocation8 + $0x310] sm:$0xf0] }
 0x162   : > { %2891 = vmatpush.bf16.msrb.mxu3 %v4333_v47  ;;  %v5158_v47 = vld [vmem:[#allocation8 + $0x154] sm:$0xf0]  ;;  %2866 = vmatpush.bf16.msra.mxu2 %v4537_v51 }
 0x163   : > { %v4445_v37 = vor.u32 %v5158_v47, %v4444_v44  ;;  %v1841_v44 = vadd.f32 %v1840_v13, %v1827_v29  ;;  %v4494_v47 = vld [vmem:[#allocation8 + $0x1b8] sm:$0xf0]  ;;  %v5211_v29 = vld [vmem:[#allocation8 + $0x304] sm:$0xf] }
 0x164   : > { %v4497_v60 = vor.u32 %v5168_v7, %v4494_v47  ;;  %v4604_v7 = vld [vmem:[#allocation8 + $0x288] sm:$0xf]  ;;  %v5198_v47 = vld [vmem:[#allocation8 + $0x294] sm:$0xf0] }
 0x165   : > { %2823 = vmatpush.bf16.msrb.mxu0 %v4677_v52  ;;  %2906 = vmatpush.bf16.msrb.mxu1 %v4445_v37  ;;  %v4305_v52 = vor.u32 %v5120_v34, %v4302_v39  ;;  %v5223_v37 = vld [vmem:[#allocation8 + $0x364] sm:$0xf] }
 0x166   : > { %2892 = vmatpush.bf16.msrb.mxu3 %v4317_v59  ;;  %v5132_v59 = vld [vmem:[#allocation8 + $0x8c] sm:$0xf] }
 0x167   : > { %v4353_v6 = vor.u32 %v5132_v59, %v4350_v61  ;;  %v1843_v59 = vadd.f32 %v1842_v49, %v1829_v54  ;;  %v4414_v54 = vld [vmem:[#allocation8 + $0x118] sm:$0xf0] }
 0x169   : > { %2824 = vmatpush.bf16.msrb.mxu0 %v4661_v0  ;;  %v1854_v55 = vpop.f32.mrf.mxu1  ;;  %2907 = vmatpush.bf16.msrb.mxu1 %v4429_v5  ;;  %v4694_v5 = vld [vmem:[#allocation8 + $0x350] sm:$0xf0] }
 0x16a   : > { %2893 = vmatpush.bf16.msrb.mxu3 %v4301_v10  ;;  %v5150_v10 = vld [vmem:[#allocation8 + $0x114] sm:$0xf0]  ;;  %v1855_v51 = vadd.f32 %v1854_v55, %v1841_v44  ;;  %v5148_v44 = vld [vmem:[#allocation8 + $0x10c] sm:$0xf] }
 0x16b   : > { %v4413_v24 = vor.u32 %v5150_v10, %v4412_v11  ;;  %v5160_v10 = vld [vmem:[#allocation8 + $0x16c] sm:$0xf] }
 0x16d   : > { %2873 = vmatpush.bf16.msra.mxu0 %v4777_v3  ;;  %2908 = vmatpush.bf16.msrb.mxu1 %v4413_v24  ;;  %v5219_v3 = vld [vmem:[#allocation8 + $0x344] sm:$0xf]  ;;  %v5156_v24 = vld [vmem:[#allocation8 + $0x14c] sm:$0xf] }
 0x16e   : > { %2894 = vmatpush.bf16.msrb.mxu3 %v4285_v25  ;;  %v4337_v25 = vor.u32 %v5128_v12, %v4334_v15  ;;  %v4462_v12 = vld [vmem:[#allocation8 + $0x178] sm:$0xf0]  ;;  %v4697_v13 = vor.u32 %v5219_v3, %v4694_v5  ;;  %v1910_v15 = vpop.f32.mrf.mxu0  ;;  %v5186_v3 = vld [vmem:[#allocation8 + $0x234] sm:$0xf0] }
 0x16f   : > { %v4465_v19 = vor.u32 %v5160_v10, %v4462_v12 }
 0x170   : > { %2909 = vmatmul.bf16.vlgmr.msrb.gmra.mxu1 %v5922_v35 }
 0x171   : > { %2895 = vmatmul.bf16.vlgmr.msrb.gmra.mxu3 %v5913_v45  ;;  %2874 = vmatpush.bf16.msra.mxu0 %v4761_v23  ;;  %v1856_v56 = vpop.f32.mrf.mxu1 }
 0x172   : > { %2943 = vmatpush.bf16.msra.mxu3 %v4401_v28  ;;  %v5231_v28 = vld [vmem:[#allocation8 + $0x3a4] sm:$0xf]  ;;  %2957 = vmatpush.bf16.msra.mxu1 %v4529_v27  ;;  %v1857_v0 = vadd.f32 %v1856_v56, %v1843_v59 }
 0x173   : > { %v4745_v8 = vor.u32 %v5231_v28, %v4742_v21  ;;  %v5206_v28 = vld [vmem:[#allocation8 + $0x2d4] sm:$0xf0] }
 0x174   : > { %v1868_v36 = vpop.f32.mrf.mxu3  ;;  %v4637_v34 = vor.u32 %v5206_v28, %v4636_v50  ;;  %v4780_v50 = vld [vmem:[#allocation8 + $0x3e8] sm:$0xf]  ;;  %v5242_v28 = vld [vmem:[#allocation8 + $0x3f4] sm:$0xf0] }
 0x175   : > { %2875 = vmatpush.bf16.msra.mxu0 %v4745_v8  ;;  %v1869_v40 = vadd.f32 %v1868_v36, %v1855_v51  ;;  %v4430_v8 = vld [vmem:[#allocation8 + $0x138] sm:$0xf0]  ;;  %v5202_v36 = vld [vmem:[#allocation8 + $0x2b4] sm:$0xf0]  ;;  %v4605_v51 = vor.u32 %v5198_v47, %v4604_v7  ;;  %v4732_v47 = vld [vmem:[#allocation8 + $0x388] sm:$0xf] }
 0x176   : > { %2944 = vmatpush.bf16.msra.mxu3 %v4385_v43  ;;  %v4726_v43 = vld [vmem:[#allocation8 + $0x390] sm:$0xf0]  ;;  %2958 = vmatpush.bf16.msra.mxu1 %v4513_v38  ;;  %v1896_v18 = vpop.f32.mrf.mxu2  ;;  %v4433_v39 = vor.u32 %v5152_v32, %v4430_v8  ;;  %v5200_v32 = vld [vmem:[#allocation8 + $0x2ac] sm:$0xf]  ;;  %v4622_v8 = vld [vmem:[#allocation8 + $0x2b8] sm:$0xf0] }
 0x177   : > { %v4729_v48 = vor.u32 %v5227_v41, %v4726_v43  ;;  %v1897_v41 = vadd.f32 %v1896_v18, %v604_v31  ;;  %v1912_v43 = vpop.f32.mrf.mxu0  ;;  %v4654_v18 = vld [vmem:[#allocation8 + $0x2f8] sm:$0xf0] }
 0x178   : > { %v4590_v7 = vld [vmem:[#allocation8 + $0x278] sm:$0xf0] }
 0x179   : > { %2876 = vmatpush.bf16.msra.mxu0 %v4729_v48  ;;  %v4417_v48 = vor.u32 %v5148_v44, %v4414_v54  ;;  %v1911_v49 = vadd.f32 %v1910_v15, %v1897_v41  ;;  %v4540_v15 = vld [vmem:[#allocation8 + $0x208] sm:$0xf]  ;;  %v4606_v41 = vld [vmem:[#allocation8 + $0x298] sm:$0xf0]  ;;  %v5234_v44 = vld [vmem:[#allocation8 + $0x3b4] sm:$0xf0] }
 0x17a   : > { %2945 = vmatpush.bf16.msra.mxu3 %v4369_v58  ;;  %v4710_v58 = vld [vmem:[#allocation8 + $0x370] sm:$0xf0]  ;;  %2959 = vmatpush.bf16.msra.mxu1 %v4497_v60 }
 0x17b   : > { %v4713_v61 = vor.u32 %v5223_v37, %v4710_v58 }
 0x17c   : > { %v1870_v2 = vpop.f32.mrf.mxu3 }
 0x17d   : > { %v1871_v11 = vadd.f32 %v1870_v2, %v1857_v0  ;;  %2877 = vmatpush.bf16.msra.mxu0 %v4713_v61  ;;  %v5190_v61 = vld [vmem:[#allocation8 + $0x254] sm:$0xf0] }
 0x17e   : > { %2946 = vmatpush.bf16.msra.mxu3 %v4353_v6  ;;  %v1883_v6 = vadd.f32 %v5932_v4, %v1869_v40  ;;  %2960 = vmatpush.bf16.msra.mxu1 %v4481_v63  ;;  %v4681_v4 = vor.u32 %v5215_v22, %v4678_v20  ;;  %v4556_v63 = vld [vmem:[#allocation8 + $0x228] sm:$0xf] }
 0x17f   : > { %v1885_v14 = vadd.f32 %v1884_v46, %v1871_v11  ;;  %v1898_v46 = vpop.f32.mrf.mxu2  ;;  %v4557_v12 = vor.u32 %v5186_v3, %v4556_v63  ;;  %v5218_v63 = vld [vmem:[#allocation8 + $0x334] sm:$0xf0] }
 0x180   : > { %v1987_v23 = vmax.f32 %v1883_v6, 0.0  ;;  %v1899_v37 = vadd.f32 %v1898_v46, %v604_v31  ;;  %v4781_v31 = vor.u32 %v5242_v28, %v4780_v50  ;;  %v5216_v50 = vld [vmem:[#allocation8 + $0x32c] sm:$0xf]  ;;  %v4686_v28 = vld [vmem:[#allocation8 + $0x338] sm:$0xf0] }
 0x181   : > { %v1991_v55 = vmax.f32 %v1885_v14, 0.0  ;;  %2878 = vmatpush.bf16.msra.mxu0 %v4697_v13 }
 0x182   : > { %2947 = vmatpush.bf16.msra.mxu3 %v4337_v25  ;;  %v4446_v25 = vld [vmem:[#allocation8 + $0x158] sm:$0xf0]  ;;  %2961 = vmatpush.bf16.msra.mxu1 %v4465_v19  ;;  %v1913_v0 = vadd.f32 %v1912_v43, %v1899_v37  ;;  %v4748_v43 = vld [vmem:[#allocation8 + $0x3a8] sm:$0xf] }
 0x183   : > { %v5939_v27 = vpack.c.bf16 %v1991_v55, %v1987_v23  ;;  %v4449_v21 = vor.u32 %v5156_v24, %v4446_v25  ;;  %v4657_v55 = vor.u32 %v5208_v17, %v4654_v18  ;;  %v5204_v25 = vld [vmem:[#allocation8 + $0x2cc] sm:$0xf]  ;;  %v4749_v46 = vor.u32 %v5234_v44, %v4748_v43  ;;  %v4750_v18 = vld [vmem:[#allocation8 + $0x3b8] sm:$0xf0] }
 0x184   : > { %v5232_v17 = vld [vmem:[#allocation8 + $0x3ac] sm:$0xf] }
 0x185   : > { %2811 = vmatmul.bf16.vlgmr.msrb.gmra.mxu2 %v5939_v27  ;;  %2879 = vmatpush.bf16.msra.mxu0 %v4681_v4  ;;  %v4638_v4 = vld [vmem:[#allocation8 + $0x2d8] sm:$0xf0]  ;;  %v5244_v43 = vld [vmem:[#allocation11 + $0x8] sm:$0xff] }
 0x186   : > { %2948 = vmatpush.bf16.msra.mxu3 %v4321_v33  ;;  %v4665_v33 = vor.u32 %v5211_v29, %v4662_v30  ;;  %2915 = vmatpush.bf16.msrb.mxu2 %v4653_v26  ;;  %v4641_v30 = vor.u32 %v5204_v25, %v4638_v4  ;;  %v4702_v4 = vld [vmem:[#allocation8 + $0x358] sm:$0xf0]  ;;  %v5256_v44 = vld [vmem:[#allocation11 + $0x68] sm:$0xff] }
 0x187   : > { %2962 = vmatpush.bf16.msra.mxu1 %v4449_v21 }
 0x189   : > { %v1924_v38 = vpop.f32.mrf.mxu1  ;;  %2880 = vmatpush.bf16.msra.mxu0 %v4665_v33 }
 0x18a   : > { %2949 = vmatpush.bf16.msra.mxu3 %v4305_v52  ;;  %2916 = vmatpush.bf16.msrb.mxu2 %v4637_v34  ;;  %v4588_v52 = vld [vmem:[#allocation8 + $0x268] sm:$0xf]  ;;  %v1925_v60 = vadd.f32 %v1924_v38, %v1911_v49 }
 0x18b   : > { %2963 = vmatpush.bf16.msra.mxu1 %v4433_v39  ;;  %v4589_v59 = vor.u32 %v5194_v53, %v4588_v52  ;;  %v4764_v34 = vld [vmem:[#allocation8 + $0x3c8] sm:$0xf]  ;;  %v5196_v39 = vld [vmem:[#allocation8 + $0x28c] sm:$0xf]  ;;  %v4574_v53 = vld [vmem:[#allocation8 + $0x258] sm:$0xf0] }
 0x18c   : > { %v1966_v40 = vpop.f32.mrf.mxu0  ;;  %v4609_v54 = vor.u32 %v5196_v39, %v4606_v41  ;;  %v5188_v52 = vld [vmem:[#allocation8 + $0x24c] sm:$0xf]  ;;  %v5245_v39 = vld [vmem:[#allocation11 + $0x10] sm:$0xff] }
 0x18d   : > { %v5257_v41 = vld [vmem:[#allocation11 + $0x70] sm:$0xff] }
 0x18e   : > { %2950 = vmatpush.bf16.msra.mxu3 %v4289_v1  ;;  %v4573_v1 = vor.u32 %v5190_v61, %v4572_v62 }
 0x18f   : > { %2964 = vmatpush.bf16.msra.mxu1 %v4417_v48  ;;  %v5230_v48 = vld [vmem:[#allocation8 + $0x394] sm:$0xf0] }
 0x191   : > { %2951 = vmatmul.bf16.vlgmr.msra.gmra.mxu3 %v5913_v45  ;;  %v4620_v45 = vld [vmem:[#allocation8 + $0x2a8] sm:$0xf]  ;;  %v1926_v56 = vpop.f32.mrf.mxu1 }
 0x192   : > { %v4621_v9 = vor.u32 %v5202_v36, %v4620_v45  ;;  %2965 = vmatmul.bf16.vlgmr.msra.gmra.mxu1 %v5922_v35  ;;  %v1927_v5 = vadd.f32 %v1926_v56, %v1913_v0  ;;  %v5182_v35 = vld [vmem:[#allocation8 + $0x214] sm:$0xf0]  ;;  %v4625_v36 = vor.u32 %v5200_v32, %v4622_v8  ;;  %v4716_v56 = vld [vmem:[#allocation8 + $0x368] sm:$0xf]  ;;  %v5180_v0 = vld [vmem:[#allocation8 + $0x20c] sm:$0xf] }
 0x193   : > { %v4541_v20 = vor.u32 %v5182_v35, %v4540_v15  ;;  %v5238_v45 = vld [vmem:[#allocation8 + $0x3d4] sm:$0xf0]  ;;  %v5236_v15 = vld [vmem:[#allocation8 + $0x3cc] sm:$0xf]  ;;  %v4766_v35 = vld [vmem:[#allocation8 + $0x3d8] sm:$0xf0] }
 0x194   : > { %2917 = vmatpush.bf16.msrb.mxu2 %v4621_v9  ;;  %v1938_v57 = vpop.f32.mrf.mxu3  ;;  %v1968_v19 = vpop.f32.mrf.mxu0  ;;  %v4765_v38 = vor.u32 %v5238_v45, %v4764_v34  ;;  %v5192_v9 = vld [vmem:[#allocation8 + $0x26c] sm:$0xf]  ;;  %v5250_v32 = vld [vmem:[#allocation11 + $0x38] sm:$0xff]  ;;  %v5249_v8 = vld [vmem:[#allocation11 + $0x30] sm:$0xff] }
 0x195   : > { %v1952_v58 = vpop.f32.mrf.mxu2  ;;  %v1939_v42 = vadd.f32 %v1938_v57, %v1925_v60  ;;  %2867 = vmatmul.bf16.vlgmr.msra.gmra.mxu2 %v5939_v27  ;;  %v4593_v49 = vor.u32 %v5192_v9, %v4590_v7  ;;  %v5226_v60 = vld [vmem:[#allocation8 + $0x374] sm:$0xf0]  ;;  %v4577_v57 = vor.u32 %v5188_v52, %v4574_v53  ;;  %3271 = vmatpush.bf16.msrb.mxu3 %v5250_v32  ;;  %v5248_v34 = vld [vmem:[#allocation11 + $0x28] sm:$0xff]  ;;  %v5247_v45 = vld [vmem:[#allocation11 + $0x20] sm:$0xff] }
 0x196   : > { %v4717_v37 = vor.u32 %v5226_v60, %v4716_v56  ;;  %v5266_v9 = vld [vmem:[#allocation11 + $0xb8] sm:$0xff]  ;;  %v5252_v52 = vld [vmem:[#allocation11 + $0x48] sm:$0xff] }
 0x197   : > { %v1953_v2 = vadd.f32 %v1952_v58, %v1939_v42  ;;  %v5184_v58 = vld [vmem:[#allocation8 + $0x22c] sm:$0xf]  ;;  %v5222_v42 = vld [vmem:[#allocation8 + $0x354] sm:$0xf0]  ;;  %v5953_v56 = vld [vmem:[#allocation10] sm:$0xf] }
 0x198   : > { %2918 = vmatpush.bf16.msrb.mxu2 %v4605_v51  ;;  %v4733_v51 = vor.u32 %v5230_v48, %v4732_v47  ;;  %v5264_v53 = vld [vmem:[#allocation11 + $0xa8] sm:$0xff] }
 0x199   : > { %v1980_v6 = vpop.f32.mrf.mxu1  ;;  %v1967_v13 = vadd.f32 %v1966_v40, %v1953_v2  ;;  %v4700_v40 = vld [vmem:[#allocation8 + $0x348] sm:$0xf]  ;;  %3272 = vmatpush.bf16.msrb.mxu3 %v5249_v8 }
 0x19a   : > { %v4701_v61 = vor.u32 %v5222_v42, %v4700_v40  ;;  %v4684_v2 = vld [vmem:[#allocation8 + $0x328] sm:$0xf]  ;;  %v2127_v40 = vperm.slane %v5953_v56, 0  ;;  %v5262_v42 = vld [vmem:[#allocation11 + $0x98] sm:$0xff] }
 0x19b   : > { %v1981_v23 = vadd.f32 %v1980_v6, %v1967_v13  ;;  %v4668_v6 = vld [vmem:[#allocation8 + $0x308] sm:$0xf] }
 0x19c   : > { %2919 = vmatpush.bf16.msrb.mxu2 %v4589_v59  ;;  %v1940_v11 = vpop.f32.mrf.mxu3  ;;  %v4558_v59 = vld [vmem:[#allocation8 + $0x238] sm:$0xf0] }
 0x19d   : > { %v1941_v10 = vadd.f32 %v1940_v11, %v1927_v5  ;;  %v1954_v14 = vpop.f32.mrf.mxu2  ;;  %v1988_v21 = vmax.f32 %v1981_v23, 0.0  ;;  %v4561_v62 = vor.u32 %v5184_v58, %v4558_v59  ;;  %v4685_v5 = vor.u32 %v5218_v63, %v4684_v2  ;;  %v5214_v11 = vld [vmem:[#allocation8 + $0x314] sm:$0xf0]  ;;  %3273 = vmatpush.bf16.msrb.mxu3 %v5248_v34 }
 0x19e   : > { %v4669_v13 = vor.u32 %v5214_v11, %v4668_v6  ;;  %v5261_v2 = vld [vmem:[#allocation11 + $0x90] sm:$0xff] }
 0x19f   : > { %v1955_v16 = vadd.f32 %v1954_v14, %v1941_v10  ;;  %v5240_v10 = vld [vmem:[#allocation8 + $0x3ec] sm:$0xf] }
 0x1a0   : > { %2920 = vmatpush.bf16.msrb.mxu2 %v4573_v1  ;;  %v4542_v1 = vld [vmem:[#allocation8 + $0x218] sm:$0xf0] }
 0x1a1   : > { %v1969_v22 = vadd.f32 %v1968_v19, %v1955_v16  ;;  %v1982_v24 = vpop.f32.mrf.mxu1  ;;  %v4545_v3 = vor.u32 %v5180_v0, %v4542_v1  ;;  %v4769_v16 = vor.u32 %v5236_v15, %v4766_v35  ;;  %v4753_v19 = vor.u32 %v5232_v17, %v4750_v18  ;;  %3274 = vmatpush.bf16.msrb.mxu3 %v5247_v45  ;;  %v5259_v17 = vld [vmem:[#allocation11 + $0x80] sm:$0xff]  ;;  %v5274_v18 = vld [vmem:[#allocation11 + $0xf8] sm:$0xff] }
 0x1a3   : > { %v1983_v26 = vadd.f32 %v1982_v24, %v1969_v22  ;;  %v5228_v22 = vld [vmem:[#allocation8 + $0x38c] sm:$0xf]  ;;  %v4718_v24 = vld [vmem:[#allocation8 + $0x378] sm:$0xf0] }
 0x1a4   : > { %2921 = vmatpush.bf16.msrb.mxu2 %v4557_v12  ;;  %v4782_v12 = vld [vmem:[#allocation8 + $0x3f8] sm:$0xf0] }
 0x1a5   : > { %v1992_v29 = vmax.f32 %v1983_v26, 0.0  ;;  %v4785_v14 = vor.u32 %v5240_v10, %v4782_v12 }
 0x1a7   : > { %v5945_v33 = vpack.c.bf16 %v1992_v29, %v1988_v21  ;;  %v4689_v21 = vor.u32 %v5216_v50, %v4686_v28  ;;  %v5212_v29 = vld [vmem:[#allocation8 + $0x30c] sm:$0xf] }
 0x1a8   : > { %2922 = vmatpush.bf16.msrb.mxu2 %v4541_v20  ;;  %v4734_v20 = vld [vmem:[#allocation8 + $0x398] sm:$0xf0] }
 0x1a9   : > { %2825 = vmatmul.bf16.vlgmr.msrb.gmra.mxu0 %v5945_v33  ;;  %v4737_v23 = vor.u32 %v5228_v22, %v4734_v20 }
 0x1aa   : > { %2929 = vmatpush.bf16.msrb.mxu0 %v4781_v31 }
 0x1ab   : > { %2923 = vmatmul.bf16.vlgmr.msrb.gmra.mxu2 %v5939_v27 }
 0x1ac   : > { %2971 = vmatpush.bf16.msra.mxu2 %v4657_v55  ;;  %v5224_v55 = vld [vmem:[#allocation8 + $0x36c] sm:$0xf] }
 0x1ad   : > { %v4721_v25 = vor.u32 %v5224_v55, %v4718_v24  ;;  %v5273_v55 = vld [vmem:[#allocation11 + $0xf0] sm:$0xff] }
 0x1ae   : > { %2930 = vmatpush.bf16.msrb.mxu0 %v4765_v38  ;;  %v5258_v38 = vld [vmem:[#allocation11 + $0x78] sm:$0xff] }
 0x1af   : > { %3285 = vmatpush.bf16.msrb.mxu1 %v5258_v38 }
 0x1b0   : > { %2972 = vmatpush.bf16.msra.mxu2 %v4641_v30  ;;  %v4670_v30 = vld [vmem:[#allocation8 + $0x318] sm:$0xf0] }
 0x1b1   : > { %v4673_v31 = vor.u32 %v5212_v29, %v4670_v30  ;;  %v5271_v29 = vld [vmem:[#allocation11 + $0xe0] sm:$0xff] }
 0x1b2   : > { %2931 = vmatpush.bf16.msrb.mxu0 %v4749_v46  ;;  %v5254_v46 = vld [vmem:[#allocation11 + $0x58] sm:$0xff] }
 0x1b3   : > { %3286 = vmatpush.bf16.msrb.mxu1 %v5257_v41  ;;  %v5270_v41 = vld [vmem:[#allocation11 + $0xd8] sm:$0xff] }
 0x1b4   : > { %2973 = vmatpush.bf16.msra.mxu2 %v4625_v36  ;;  %v5246_v36 = vld [vmem:[#allocation11 + $0x18] sm:$0xff]  ;;  %v2784_v47 = vpop.f32.mrf.mxu3 }
 0x1b5   : > { %3275 = vmatpush.bf16.msrb.mxu3 %v5246_v36 }
 0x1b6   : > { %2932 = vmatpush.bf16.msrb.mxu0 %v4733_v51  ;;  %v5265_v51 = vld [vmem:[#allocation11 + $0xb0] sm:$0xff] }
 0x1b7   : > { %3287 = vmatpush.bf16.msrb.mxu1 %v5256_v44 }
 0x1b8   : > { %2974 = vmatpush.bf16.msra.mxu2 %v4609_v54  ;;  %v5255_v54 = vld [vmem:[#allocation11 + $0x60] sm:$0xff] }
 0x1b9   : > { %2881 = vmatmul.bf16.vlgmr.msra.gmra.mxu0 %v5945_v33  ;;  %3276 = vmatpush.bf16.msrb.mxu3 %v5245_v39 }
 0x1ba   : > { %2933 = vmatpush.bf16.msrb.mxu0 %v4717_v37  ;;  %v5263_v37 = vld [vmem:[#allocation11 + $0xa0] sm:$0xff] }
 0x1bb   : > { %3288 = vmatpush.bf16.msrb.mxu1 %v5255_v54 }
 0x1bc   : > { %2975 = vmatpush.bf16.msra.mxu2 %v4593_v49  ;;  %v5253_v49 = vld [vmem:[#allocation11 + $0x50] sm:$0xff]  ;;  %v2786_v58 = vpop.f32.mrf.mxu3 }
 0x1bd   : > { %3277 = vmatpush.bf16.msrb.mxu3 %v5244_v43  ;;  %v2787_v0 = vadd.f32 %v2786_v58, %v2127_v40  ;;  %v2129_v43 = vperm.slane %v5953_v56, 2 }
 0x1be   : > { %2934 = vmatpush.bf16.msrb.mxu0 %v4701_v61  ;;  %v2785_v61 = vadd.f32 %v2784_v47, %v2127_v40 }
 0x1bf   : > { %3289 = vmatpush.bf16.msrb.mxu1 %v5254_v46 }
 0x1c0   : > { %2976 = vmatpush.bf16.msra.mxu2 %v4577_v57  ;;  %v5251_v57 = vld [vmem:[#allocation11 + $0x40] sm:$0xff] }
 0x1c2   : > { %2935 = vmatpush.bf16.msrb.mxu0 %v4685_v5 }
 0x1c3   : > { %3290 = vmatpush.bf16.msrb.mxu1 %v5253_v49  ;;  %v5268_v49 = vld [vmem:[#allocation11 + $0xc8] sm:$0xff] }
 0x1c4   : > { %2977 = vmatpush.bf16.msra.mxu2 %v4561_v62 }
 0x1c6   : > { %2936 = vmatpush.bf16.msrb.mxu0 %v4669_v13  ;;  %v5260_v13 = vld [vmem:[#allocation11 + $0x88] sm:$0xff] }
 0x1c7   : > { %3291 = vmatpush.bf16.msrb.mxu1 %v5252_v52 }
 0x1c8   : > { %2978 = vmatpush.bf16.msra.mxu2 %v4545_v3 }
 0x1c9   : > { %2937 = vmatmul.bf16.vlgmr.msrb.gmra.mxu0 %v5945_v33 }
 0x1ca   : > { %2985 = vmatpush.bf16.msra.mxu0 %v4785_v14 }
 0x1cb   : > { %2979 = vmatmul.bf16.vlgmr.msra.gmra.mxu2 %v5939_v27  ;;  %v5220_v27 = vld [vmem:[#allocation8 + $0x34c] sm:$0xf]  ;;  %3292 = vmatpush.bf16.msrb.mxu1 %v5251_v57 }
 0x1cc   : > { %v4705_v26 = vor.u32 %v5220_v27, %v4702_v4  ;;  %v2798_v7 = vpop.f32.mrf.mxu1  ;;  %3299 = vmatpush.bf16.msrb.mxu2 %v5266_v9  ;;  %v5272_v4 = vld [vmem:[#allocation11 + $0xe8] sm:$0xff] }
 0x1cd   : > { %v2799_v1 = vadd.f32 %v2798_v7, %v2785_v61 }
 0x1ce   : > { %2986 = vmatpush.bf16.msra.mxu0 %v4769_v16 }
 0x1d0   : > { %3300 = vmatpush.bf16.msrb.mxu2 %v5265_v51 }
 0x1d2   : > { %2987 = vmatpush.bf16.msra.mxu0 %v4753_v19  ;;  %v2128_v19 = vperm.slane %v5953_v56, 1 }
 0x1d4   : > { %3301 = vmatpush.bf16.msrb.mxu2 %v5264_v53  ;;  %v2800_v60 = vpop.f32.mrf.mxu1  ;;  %v2840_v63 = vpop.f32.mrf.mxu3 }
 0x1d5   : > { %v2801_v5 = vadd.f32 %v2800_v60, %v2787_v0  ;;  %v2841_v27 = vadd.f32 %v2840_v63, %v2128_v19 }
 0x1d6   : > { %2988 = vmatpush.bf16.msra.mxu0 %v4737_v23 }
 0x1d8   : > { %3302 = vmatpush.bf16.msrb.mxu2 %v5263_v37  ;;  %v5267_v37 = vld [vmem:[#allocation11 + $0xc0] sm:$0xff] }
 0x1da   : > { %2989 = vmatpush.bf16.msra.mxu0 %v4721_v25 }
 0x1dc   : > { %3303 = vmatpush.bf16.msrb.mxu2 %v5262_v42  ;;  %v2854_v3 = vpop.f32.mrf.mxu1  ;;  %v2842_v20 = vpop.f32.mrf.mxu3 }
 0x1dd   : > { %v2855_v50 = vadd.f32 %v2854_v3, %v2841_v27 }
 0x1de   : > { %2990 = vmatpush.bf16.msra.mxu0 %v4705_v26  ;;  %v2843_v26 = vadd.f32 %v2842_v20, %v2128_v19 }
 0x1e0   : > { %3304 = vmatpush.bf16.msrb.mxu2 %v5261_v2  ;;  %v2130_v2 = vperm.slane %v5953_v56, 3 }
 0x1e2   : > { %2991 = vmatpush.bf16.msra.mxu0 %v4689_v21 }
 0x1e4   : > { %3305 = vmatpush.bf16.msrb.mxu2 %v5260_v13  ;;  %v2856_v23 = vpop.f32.mrf.mxu1 }
 0x1e5   : > { %v2857_v28 = vadd.f32 %v2856_v23, %v2843_v26 }
 0x1e6   : > { %2992 = vmatpush.bf16.msra.mxu0 %v4673_v31 }
 0x1e8   : > { %3306 = vmatpush.bf16.msrb.mxu2 %v5259_v17 }
 0x1e9   : > { %2993 = vmatmul.bf16.vlgmr.msra.gmra.mxu0 %v5945_v33  ;;  %v5243_v33 = vld [vmem:[#allocation11] sm:$0xff] }
 0x1ea   : > { %3278 = vmatpush.bf16.msrb.mxu3 %v5243_v33  ;;  %3313 = vmatpush.bf16.msrb.mxu0 %v5274_v18  ;;  %v5269_v33 = vld [vmem:[#allocation11 + $0xd0] sm:$0xff] }
 0x1ed   : > { %v2910_v8 = vpop.f32.mrf.mxu1 }
 0x1ee   : > { %3314 = vmatpush.bf16.msrb.mxu0 %v5273_v55  ;;  %v5389_v55 = vld [vmem:[%s6002_s6] ss:$0 sm:$0xff] }
 0x1f2   : > { %3315 = vmatpush.bf16.msrb.mxu0 %v5272_v4 }
 0x1f4   : > { %v2896_v30 = vpop.f32.mrf.mxu3 }
 0x1f5   : > { %v2897_v9 = vadd.f32 %v2896_v30, %v2129_v43  ;;  %v2912_v7 = vpop.f32.mrf.mxu1 }
 0x1f6   : > { %3316 = vmatpush.bf16.msrb.mxu0 %v5271_v29 }
 0x1fa   : > { %3317 = vmatpush.bf16.msrb.mxu0 %v5270_v41 }
 0x1fc   : > { %v2898_v54 = vpop.f32.mrf.mxu3 }
 0x1fd   : > { %v2899_v47 = vadd.f32 %v2898_v54, %v2129_v43 }
 0x1fe   : > { %3318 = vmatpush.bf16.msrb.mxu0 %v5269_v33 }
 0x1ff   : > { %v2913_v52 = vadd.f32 %v2912_v7, %v2899_v47 }
 0x202   : > { %3319 = vmatpush.bf16.msrb.mxu0 %v5268_v49 }
 0x206   : > { %3320 = vmatpush.bf16.msrb.mxu0 %v5267_v37 }
 0x208   : > { %v2812_v48 = vpop.f32.mrf.mxu2 }
 0x209   : > { %v2813_v6 = vadd.f32 %v2812_v48, %v2799_v1  ;;  %v2911_v48 = vadd.f32 %v2910_v8, %v2897_v9 }
 0x20f   : > { %v2966_v0 = vpop.f32.mrf.mxu1 }
 0x210   : > { %v2814_v59 = vpop.f32.mrf.mxu2 }
 0x211   : > { %v2815_v10 = vadd.f32 %v2814_v59, %v2801_v5 }
 0x214   : > { %v2952_v61 = vpop.f32.mrf.mxu3 }
 0x215   : > { %v2953_v5 = vadd.f32 %v2952_v61, %v2130_v2 }
 0x218   : > { %v2868_v11 = vpop.f32.mrf.mxu2 }
 0x219   : > { %v2869_v21 = vadd.f32 %v2868_v11, %v2855_v50 }
 0x21c   : > { %v2954_v63 = vpop.f32.mrf.mxu3 }
 0x21d   : > { %v2955_v11 = vadd.f32 %v2954_v63, %v2130_v2 }
 0x220   : > { %v2870_v24 = vpop.f32.mrf.mxu2 }
 0x221   : > { %v2871_v31 = vadd.f32 %v2870_v24, %v2857_v28 }
 0x226   : > { %v2826_v62 = vpop.f32.mrf.mxu0 }
 0x227   : > { %v2827_v12 = vadd.f32 %v2826_v62, %v2813_v6  ;;  %v2968_v6 = vpop.f32.mrf.mxu1 }
 0x228   : > { %v2969_v13 = vadd.f32 %v2968_v6, %v2955_v11 }
 0x229   : > { %v2999_v35 = vmax.f32 %v2827_v12, 0.0 }
 0x22e   : > { %v2828_v14 = vpop.f32.mrf.mxu0  ;;  %v2924_v36 = vpop.f32.mrf.mxu2 }
 0x22f   : > { %v2829_v15 = vadd.f32 %v2828_v14, %v2815_v10  ;;  %v2925_v53 = vadd.f32 %v2924_v36, %v2911_v48  ;;  %v2967_v10 = vadd.f32 %v2966_v0, %v2953_v5 }
 0x231   : > { %v3003_v16 = vmax.f32 %v2829_v15, 0.0 }
 0x233   : > { %v3007_v22 = vpack.c.bf16 %v3003_v16, %v2999_v35 }
 0x235   : > { %3279 = vmatmul.bf16.vlgmr.msrb.gmra.mxu3 %v3007_v22 }
 0x236   : > { %v2882_v25 = vpop.f32.mrf.mxu0  ;;  %v2926_v51 = vpop.f32.mrf.mxu2 }
 0x237   : > { %v2883_v32 = vadd.f32 %v2882_v25, %v2869_v21  ;;  %v2927_v60 = vadd.f32 %v2926_v51, %v2913_v52 }
 0x239   : > { %v3000_v38 = vmax.f32 %v2883_v32, 0.0 }
 0x23e   : > { %v2884_v34 = vpop.f32.mrf.mxu0 }
 0x23f   : > { %v2885_v45 = vadd.f32 %v2884_v34, %v2871_v31 }
 0x241   : > { %v3004_v39 = vmax.f32 %v2885_v45, 0.0 }
 0x243   : > { %v3008_v44 = vpack.c.bf16 %v3004_v39, %v3000_v38 }
 0x245   : > { %3293 = vmatmul.bf16.vlgmr.msrb.gmra.mxu1 %v3008_v44 }
 0x246   : > { %v2938_v46 = vpop.f32.mrf.mxu0 }
 0x247   : > { %v2939_v57 = vadd.f32 %v2938_v46, %v2925_v53 }
 0x249   : > { %v3001_v40 = vmax.f32 %v2939_v57, 0.0 }
 0x24e   : > { %v2940_v58 = vpop.f32.mrf.mxu0  ;;  %v2980_v1 = vpop.f32.mrf.mxu2 }
 0x24f   : > { %v2941_v59 = vadd.f32 %v2940_v58, %v2927_v60  ;;  %v2981_v14 = vadd.f32 %v2980_v1, %v2967_v10 }
 0x251   : > { %v3005_v42 = vmax.f32 %v2941_v59, 0.0 }
 0x253   : > { %v3009_v62 = vpack.c.bf16 %v3005_v42, %v3001_v40 }
 0x255   : > { %3307 = vmatmul.bf16.vlgmr.msrb.gmra.mxu2 %v3009_v62 }
 0x256   : > { %v2982_v12 = vpop.f32.mrf.mxu2 }
 0x257   : > { %v2983_v15 = vadd.f32 %v2982_v12, %v2969_v13 }
 0x266   : > { %v2994_v3 = vpop.f32.mrf.mxu0 }
 0x267   : > { %v2995_v35 = vadd.f32 %v2994_v3, %v2981_v14 }
 0x269   : > { %v3002_v18 = vmax.f32 %v2995_v35, 0.0 }
 0x26e   : > { %v2996_v16 = vpop.f32.mrf.mxu0 }
 0x26f   : > { %v2997_v17 = vadd.f32 %v2996_v16, %v2983_v15 }
 0x271   : > { %v3006_v19 = vmax.f32 %v2997_v17, 0.0 }
 0x273   : > { %v3010_v22 = vpack.c.bf16 %v3006_v19, %v3002_v18 }
 0x275   : > { %3321 = vmatmul.bf16.vlgmr.msrb.gmra.mxu0 %v3010_v22 }
 0x2b8   : > { %v3280_v56 = vpop.f32.mrf.mxu3 }
 0x2b9   : > { %v3281_v4 = vadd.f32 %v5389_v55, %v3280_v56 }
 0x2c0   : > { %v3282_v24 = vpop.f32.mrf.mxu3 }
 0x2c1   : > { %v3283_v26 = vadd.f32 %v5389_v55, %v3282_v24 }
 0x2c2   : > { %v3294_v20 = vpop.f32.mrf.mxu1 }
 0x2c3   : > { %v3295_v28 = vadd.f32 %v3294_v20, %v3281_v4 }
 0x2ca   : > { %v3296_v27 = vpop.f32.mrf.mxu1 }
 0x2cb   : > { %v3297_v21 = vadd.f32 %v3296_v27, %v3283_v26 }
 0x2d8   : > { %v3308_v23 = vpop.f32.mrf.mxu2 }
 0x2d9   : > { %v3309_v29 = vadd.f32 %v3308_v23, %v3295_v28 }
 0x2e0   : > { %v3310_v50 = vpop.f32.mrf.mxu2 }
 0x2e1   : > { %v3311_v30 = vadd.f32 %v3310_v50, %v3297_v21 }
 0x2f2   : > { %v3322_v25 = vpop.f32.mrf.mxu0 }
 0x2f3   : > { %v3323_v32 = vadd.f32 %v3322_v25, %v3309_v29 }
 0x2fa   : > { %v3324_v31 = vpop.f32.mrf.mxu0 }
 0x2fb   : > { %v3325_v8 = vadd.f32 %v3324_v31, %v3311_v30 }
 0x2fd   : > { %v5279_v34 = vpack.c.bf16 %v3325_v8, %v3323_v32 }
 0x2ff   : > { %5280 = vst [vmem:[%s378_s21] sm:$0xff] %v5279_v34  }
 0x300   : > { %5597 = shalt.err (!%p5594_p9)
}
 0x301   : > { %s5661_s2 = smov 64   ;;  %s5662_s4 = smov 4  }
 0x302   : > { %5306 = dma.vmem_to_hbm [thread:$0]  (%p5789_p0), %s3345_s23, 128, %s3347_s28, %s3332_s8, %s5661_s2, %s5661_s2, %s5662_s4  }
 0x303 PF: > { %s3361_s9 = sand.u32 1, %s5636_s24   ;;  %p6018_p10 = scmp.ge.s32.totalorder %s5648_s27, 2 }
 0x304   : > { %s3362_s15 = scalar_lea.sflag [#allocation4], %s3361_s9 }
 0x305   : > { %p5329_p11 = pnand %p6018_p10, %p5795_p6 }
 0x307   : > { %p5330_p12 = pneg %p5329_p11 }
 0x309   : > { %5631 = dma.done.wait (%p5330_p12), %s3362_s15, 128  }
 0x30a   : > { %5633 = vsyncadd (%p5330_p12), %s3362_s15, 4294967168  ;;  %p23_p2 = scmp.ge.s32.totalorder %s5769_s22, 4   ;;  %s6019_s24 = smov %s5640_s25 }
 0x30b   : > { %s6020_s25 = smov %s5644_s26  ;;  %s6021_s26 = smov %s5781_s29 }
 0x30c   : > { %s6022_s27 = smov %s5769_s22  ;;  %25 = sbr.rel (!%p23_p2) target bundleno = 13 (0xd), region = 113 }
 0x311   :  { %3368 = vsyncpa [#allocation3], 1 }
 0x312   :  { %3370 = vsyncpa [#allocation3 + $0x1], 1 }
 0x313   :  { %3371 = vsyncpa [#allocation6], 1 }
 0x314   :  { %3372 = vsyncpa [#allocation9], 1 }
 0x315   :  { %3373 = vsyncpa [#allocation12], 1 }
 0x316   :  { %3374 = vsyncpa [#allocation4], 1 }
 0x317   :  { %3376 = vsyncpa [#allocation4 + $0x1], 1 }

</bundles_post_ra>
